<compile_context>
chip_gen: v7x
topology: tpu7x:2x2x1
jax: 0.10.0
libtpu: 0.0.40
codegen_flags: <defaults>
</compile_context>

<pallas_src>
import math

import jax
import jax.numpy as jnp
from jax import lax
from jax.experimental import pallas as pl
from jax.experimental.pallas import tpu as pltpu

K = 3          # kernel size of every conv in the module
NCORNER = 4    # bilinear corners


def _choose_tile(hw, lane_bytes, budget=8 << 20):
    """Pick (padded_HW, lane tile). Tile is a multiple of 128 dividing padded_HW,
    capped so the per-step working set (~lane_bytes per lane) stays under budget."""
    if hw < 128:
        return hw, hw                       # full-width (masked) single tile
    hwp = ((hw + 127) // 128) * 128
    cap = max(128, min(hwp, (budget // max(lane_bytes, 1)) // 128 * 128))
    t = 128
    for cand in range(128, cap + 1, 128):
        if hwp % cand == 0:
            t = cand
    return hwp, t


# ----------------------------------------------------------------------------
# Pallas kernel 1: conv_offset (3x3, stride 1, pad 1) + bias + Hardtanh bounds
# ----------------------------------------------------------------------------
def _offset_conv_hardtanh(taps, w36, bias, bound_min, bound_max, T):
    # taps: (N, C*9, HWp) bf16 im2col slabs (rows = c*9 + kh*3 + kw)
    # w36 : (36, C*9) bf16 (rows permuted to [dy_min, dx_min, dy_max, dx_max])
    N, CKK, HWp = taps.shape
    OC = 36
    bmin, bmax = float(bound_min), float(bound_max)

    def kernel(taps_ref, w_ref, bias_ref, out_ref):
        o = jnp.dot(w_ref[...], taps_ref[...],
                    preferred_element_type=jnp.float32) + bias_ref[...]
        row = lax.broadcasted_iota(jnp.int32, (OC, 1), 0)
        bound = jnp.where(row < OC // 2, bmin, bmax)   # rows 0..17 -> min branch
        out_ref[...] = jnp.clip(o, -bound, bound)

    flops = int(2 * N * HWp * OC * CKK)
    bytes_acc = int(N * HWp * (2 * CKK + 4 * OC) + 2 * OC * CKK + 4 * OC)
    return pl.pallas_call(
        kernel,
        out_shape=jax.ShapeDtypeStruct((N, OC, HWp), jnp.float32),
        grid=(N, HWp // T),
        in_specs=[
            pl.BlockSpec((None, CKK, T), lambda n, t: (n, 0, t)),
            pl.BlockSpec((OC, CKK), lambda n, t: (0, 0)),
            pl.BlockSpec((OC, 1), lambda n, t: (0, 0)),
        ],
        out_specs=pl.BlockSpec((None, OC, T), lambda n, t: (n, 0, t)),
        compiler_params=pltpu.CompilerParams(
            dimension_semantics=("parallel", "parallel")),
        cost_estimate=pl.CostEstimate(flops=flops, transcendentals=0,
                                      bytes_accessed=bytes_acc),
    )(taps, w36, bias)


# ----------------------------------------------------------------------------
# Pallas kernel 2: in-kernel bilinear coefficients + combine + fused conv matmul
# ----------------------------------------------------------------------------
def _deform_combine(off, grid_yx, v, w_cat, *, H, W, C, O, pads, dils, T):
    # off    : (N, 36, HWp) f32   rows = [dy_min(9), dx_min(9), dy_max(9), dx_max(9)]
    # grid_yx: (2, HWp)     f32   row0 = pixel row index, row1 = pixel col index
    # v      : (N, C*72, HWp) bf16 rows = c*72 + branch*36 + corner*9 + tap
    # w_cat  : (O, C*72)    bf16  branch-fused, corner-replicated conv weights
    N, _, HWp = off.shape
    F = C * 72
    Hf, Wf = float(H), float(W)
    pads = tuple(float(p) for p in pads)
    dils = tuple(float(d) for d in dils)

    def kernel(off_ref, yx_ref, v_ref, w_ref, out_ref):
        hg = yx_ref[0:1, :]                                   # (1, T)
        wg = yx_ref[1:2, :]
        ki = lax.broadcasted_iota(jnp.int32, (9, 1), 0)
        kh = (ki >= 3).astype(jnp.float32) + (ki >= 6).astype(jnp.float32)
        kw = ki.astype(jnp.float32) - 3.0 * kh
        coef_rows = []
        for b in range(2):                                    # 0=conv_min, 1=conv_max
            pad, dil = pads[b], dils[b]
            dy = off_ref[b * 18:b * 18 + 9, :]                # (9, T)
            dx = off_ref[b * 18 + 9:b * 18 + 18, :]
            # Same expression (and f32 rounding) as the index glue -> identical floor.
            py = (hg - pad + kh * dil) + dy
            px = (wg - pad + kw * dil) + dx
            fy = jnp.floor(py)
            fx = jnp.floor(px)
            ly, lx = py - fy, px - fx
            hy, hx = 1.0 - ly, 1.0 - lx
            inr = (py > -1.0) & (px > -1.0) & (py < Hf) & (px < Wf)
            m_yl = fy >= 0.0
            m_yh = fy <= Hf - 2.0
            m_xl = fx >= 0.0
            m_xh = fx <= Wf - 2.0
            zero = jnp.zeros_like(py)
            coef_rows.append(jnp.where(inr & m_yl & m_xl, hy * hx, zero))
            coef_rows.append(jnp.where(inr & m_yl & m_xh, hy * lx, zero))
            coef_rows.append(jnp.where(inr & m_yh & m_xl, ly * hx, zero))
            coef_rows.append(jnp.where(inr & m_yh & m_xh, ly * lx, zero))
        coef = jnp.concatenate(coef_rows, axis=0)             # (72, T) f32
        coef = jnp.tile(coef, (C, 1))                          # (C*72, T) f32
        cols = (coef * v_ref[...].astype(jnp.float32)).astype(jnp.bfloat16)
        out_ref[...] = jnp.dot(w_ref[...], cols,
                               preferred_element_type=jnp.float32)

    flops = int(2 * N * HWp * O * F + 4 * N * HWp * F)
    bytes_acc = int(N * HWp * (36 * 4 + F * 2 + O * 4) + HWp * 8 + O * F * 2)
    return pl.pallas_call(
        kernel,
        out_shape=jax.ShapeDtypeStruct((N, O, HWp), jnp.float32),
        grid=(N, HWp // T),
        in_specs=[
            pl.BlockSpec((None, 36, T), lambda n, t: (n, 0, t)),
            pl.BlockSpec((2, T), lambda n, t: (0, t)),
            pl.BlockSpec((None, F, T), lambda n, t: (n, 0, t)),
            pl.BlockSpec((O, F), lambda n, t: (0, 0)),
        ],
        out_specs=pl.BlockSpec((None, O, T), lambda n, t: (n, 0, t)),
        compiler_params=pltpu.CompilerParams(
            dimension_semantics=("parallel", "parallel")),
        cost_estimate=pl.CostEstimate(flops=flops, transcendentals=0,
                                      bytes_accessed=bytes_acc),
    )(off, grid_yx, v, w_cat)


# ----------------------------------------------------------------------------
# JAX glue: integer bilinear corner indices for one branch (DCNv1 semantics)
# ----------------------------------------------------------------------------
def _corner_indices(H, W, off_b, hg, wg, pad, dil):
    # off_b: (N, 18, HWp) f32, rows = [dy(9), dx(9)];  hg/wg: (HWp,) f32
    dy = off_b[:, :9, :]
    dx = off_b[:, 9:, :]
    kk = jnp.arange(9, dtype=jnp.int32)
    kh = (kk // 3).astype(jnp.float32)[None, :, None]
    kw = (kk % 3).astype(jnp.float32)[None, :, None]
    py = (hg[None, None, :] - pad + kh * dil) + dy             # matches kernel 2
    px = (wg[None, None, :] - pad + kw * dil) + dx
    yl = jnp.floor(py).astype(jnp.int32)
    xl = jnp.floor(px).astype(jnp.int32)
    ylc = jnp.clip(yl, 0, H - 1)
    yhc = jnp.clip(yl + 1, 0, H - 1)
    xlc = jnp.clip(xl, 0, W - 1)
    xhc = jnp.clip(xl + 1, 0, W - 1)
    i1 = ylc * W + xlc
    i2 = ylc * W + xhc
    i3 = yhc * W + xlc
    i4 = yhc * W + xhc
    return jnp.concatenate([i1, i2, i3, i4], axis=1)           # (N, 36, HWp)


# ----------------------------------------------------------------------------
# Full module forward (Pallas path)
# ----------------------------------------------------------------------------
def deform_conv_with_offset_bound_minmax(x_nchw, params, bound_min=4.0,
                                         bound_max=4.0):
    w_off, b_off, w_min, w_max = params
    N, C, H, W = x_nchw.shape
    O = w_min.shape[0]
    HW = H * W

    # lane tile (multiple of 128, VMEM-budgeted) and HW padding
    lane_bytes = 2 * (36 * 4 + C * 72 * 2 + O * 4 + 8) + (72 * 4 + C * 72 * 6)
    HWp, T = _choose_tile(HW, lane_bytes)
    pad_hw = HWp - HW

    # ---- Pallas kernel 1: conv_offset + bias + Hardtanh (bf16 MXU) ---------
    # TODO(synk): synthesize the 9 taps in-kernel from a resident x slab
    # (pltpu.roll / shifted pl.ds windows) to drop this im2col HBM round trip.
    xp = jnp.pad(x_nchw, ((0, 0), (0, 0), (1, 1), (1, 1)))
    taps = jnp.stack([xp[:, :, kh:kh + H, kw:kw + W]
                      for kh in range(K) for kw in range(K)], axis=2)
    taps = taps.reshape(N, C * 9, HW).astype(jnp.bfloat16)
    if pad_hw:
        taps = jnp.pad(taps, ((0, 0), (0, 0), (0, pad_hw)))
    # Permute conv_offset rows: original channel = b*18 + 2*k + d  ->  b*18 + d*9 + k
    w36 = (w_off.reshape(2, 9, 2, C, K, K).transpose(0, 2, 1, 3, 4, 5)
           .reshape(36, C * 9).astype(jnp.bfloat16))
    bias = (b_off.reshape(2, 9, 2).transpose(0, 2, 1)
            .reshape(36, 1).astype(jnp.float32))
    off = _offset_conv_hardtanh(taps, w36, bias, bound_min, bound_max, T)

    # ---- JAX glue: integer corner indices + packed bf16 gather -------------
    p = jnp.arange(HWp, dtype=jnp.int32)
    hg = (p // W).astype(jnp.float32)
    wg = (p % W).astype(jnp.float32)
    grid_yx = jnp.stack([hg, wg], axis=0)                         # (2, HWp)

    pad_dil_max = 1.0 + float(bound_min)   # module: conv_max pad=dil=1+bound_min
    idx = jnp.concatenate(
        [_corner_indices(H, W, off[:, :18], hg, wg, 1.0, 1.0),
         _corner_indices(H, W, off[:, 18:], hg, wg, pad_dil_max, pad_dil_max)],
        axis=1)                                                   # (N, 72, HWp)

    # TODO(synk): move this data-dependent bilinear gather into kernel 2
    # (x resident in VMEM + SMEM indices) to kill the (N, C*72, HW) round trip.
    x_cf = x_nchw.reshape(N, C, HW).astype(jnp.bfloat16)
    v = jax.vmap(lambda xc, ix: xc[:, ix])(x_cf, idx)             # (N, C, 72, HWp)
    v = v.reshape(N, C * 72, HWp)

    # conv_min/conv_max weights, branch-fused + corner-replicated: (O, C*72)
    w_cat = jnp.stack([w_min.reshape(O, C, K * K),
                       w_max.reshape(O, C, K * K)], axis=2)        # (O, C, 2, 9)
    w_cat = jnp.broadcast_to(w_cat[:, :, :, None, :], (O, C, 2, NCORNER, K * K))
    w_cat = w_cat.reshape(O, C * 72).astype(jnp.bfloat16)

    # ---- Pallas kernel 2: coefficients + combine + fused conv matmul -------
    out = _deform_combine(off, grid_yx, v, w_cat, H=H, W=W, C=C, O=O,
                          pads=(1.0, pad_dil_max), dils=(1.0, pad_dil_max), T=T)
    return out[:, :, :HW].reshape(N, O, H, W)                      # NCHW


# ----------------------------------------------------------------------------
# Plain-JAX f32 reference (independent NHWC formulation, for correctness)
# ----------------------------------------------------------------------------
def _ref_forward(x_nchw, params, bound_min=4.0, bound_max=4.0):
    w_off, b_off, w_min, w_max = params
    N, C, H, W = x_nchw.shape
    off = lax.conv_general_dilated(x_nchw, w_off, (1, 1), [(1, 1), (1, 1)],
                                   dimension_numbers=("NCHW", "OIHW", "NCHW"))
    off = off + b_off[None, :, None, None]
    off_min = jnp.clip(off[:, :18], -bound_min, bound_min)
    off_max = jnp.clip(off[:, 18:], -bound_max, bound_max)
    x_nhwc = jnp.transpose(x_nchw, (0, 2, 3, 1))

    def dconv(off_nchw, weight, pad, dil):
        o = jnp.transpose(off_nchw, (0, 2, 3, 1)).reshape(N, H, W, K, K, 2)
        dy, dx = o[..., 0], o[..., 1]
        base_y = (jnp.arange(H, dtype=jnp.float32)[:, None] - pad
                  + jnp.arange(K, dtype=jnp.float32)[None, :] * dil)
        base_x = (jnp.arange(W, dtype=jnp.float32)[:, None] - pad
                  + jnp.arange(K, dtype=jnp.float32)[None, :] * dil)
        py = base_y[None, :, None, :, None] + dy
        px = base_x[None, None, :, None, :] + dx
        hl_f, wl_f = jnp.floor(py), jnp.floor(px)
        lh, lw = py - hl_f, px - wl_f
        hh_, hw_ = 1.0 - lh, 1.0 - lw
        hl, wl = hl_f.astype(jnp.int32), wl_f.astype(jnp.int32)
        hhi, whi = hl + 1, wl + 1
        in_range = ((py > -1.0) & (px > -1.0)
                    & (py < H) & (px < W)).astype(jnp.float32)
        m_hl = (hl >= 0).astype(jnp.float32)
        m_hh = (hhi <= H - 1).astype(jnp.float32)
        m_wl = (wl >= 0).astype(jnp.float32)
        m_wh = (whi <= W - 1).astype(jnp.float32)
        w1 = hh_ * hw_ * m_hl * m_wl * in_range
        w2 = hh_ * lw * m_hl * m_wh * in_range
        w3 = lh * hw_ * m_hh * m_wl * in_range
        w4 = lh * lw * m_hh * m_wh * in_range
        hlc, hhc = jnp.clip(hl, 0, H - 1), jnp.clip(hhi, 0, H - 1)
        wlc, whc = jnp.clip(wl, 0, W - 1), jnp.clip(whi, 0, W - 1)
        b = jnp.arange(N)[:, None, None, None, None]
        v1 = x_nhwc[b, hlc, wlc]
        v2 = x_nhwc[b, hlc, whc]
        v3 = x_nhwc[b, hhc, wlc]
        v4 = x_nhwc[b, hhc, whc]
        sampled = (w1[..., None] * v1 + w2[..., None] * v2
                   + w3[..., None] * v3 + w4[..., None] * v4)
        return jnp.einsum('nhwijc,ocij->nohw', sampled, weight)

    p = 1.0 + bound_min
    return dconv(off_min, w_min, 1.0, 1.0) + dconv(off_max, w_max, p, p)


# ----------------------------------------------------------------------------
if __name__ == "__main__":
    N, C_in, C_out, H, W = 2, 4, 8, 16, 16
    key = jax.random.PRNGKey(0)
    k1, k2, k3, k4, kx = jax.random.split(key, 5)

    # NOTE: PyTorch zero-inits conv_offset; small random values are used instead
    # so the deformable sampling path is actually exercised.
    w_off = 0.25 * jax.random.normal(k1, (36, C_in, 3, 3), jnp.float32)
    b_off = 0.05 * jax.random.normal(k2, (36,), jnp.float32)
    stdv = 1.0 / math.sqrt(C_in * K * K)
    w_min = jax.random.uniform(k3, (C_out, C_in, 3, 3), jnp.float32, -stdv, stdv)
    w_max = jax.random.uniform(k4, (C_out, C_in, 3, 3), jnp.float32, -stdv, stdv)
    params = (w_off, b_off, w_min, w_max)

    x = jax.random.normal(kx, (N, C_in, H, W), jnp.float32)

    fwd = jax.jit(deform_conv_with_offset_bound_minmax)
    out = jax.block_until_ready(fwd(x, params))
    assert out.shape == (N, C_out, H, W), out.shape

    ref = _ref_forward(x, params)
    err = float(jnp.max(jnp.abs(out - ref)))
    # conv_offset, samples, coefficients and conv weights all ride the bf16 MXU
    # path (with f32 accumulation); expected max-abs deviation from the f32
    # reference is ~1e-2, well inside the 1e-1 bound below.
    assert err < 1e-1, f"max abs err {err}"

    print("KERNEL_OK")
</pallas_src>

<mosaic_0001>
module attributes {stable_mosaic.version = 11 : i64} {
  func.func @kernel(%arg0: i32, %arg1: i32, %arg2: memref<1x36x256xbf16, #tpu.memory_space<vmem>>, %arg3: memref<36x36xbf16, #tpu.memory_space<vmem>>, %arg4: memref<36x1xf32, #tpu.memory_space<vmem>>, %arg5: memref<1x36x256xf32, #tpu.memory_space<vmem>>) attributes {dimension_semantics = [#tpu.dimension_semantics<parallel>, #tpu.dimension_semantics<parallel>], iteration_bounds = array<i64: 2, 1>, scalar_prefetch = 0 : i64, scratch_operands = 0 : i64, tpu.core_type = #tpu.core_type<tc>, window_params = [{transform_indices = @transform_0, window_bounds = array<i64: 1, 36, 256>}, {pipeline_mode = #tpu.pipeline_mode<synchronous>, transform_indices = @transform_1, window_bounds = array<i64: 36, 36>}, {pipeline_mode = #tpu.pipeline_mode<synchronous>, transform_indices = @transform_2, window_bounds = array<i64: 36, 1>}, {transform_indices = @transform_3, window_bounds = array<i64: 1, 36, 256>}]} {
    %c0 = arith.constant 0 : index
    %c0_0 = arith.constant 0 : index
    %0 = vector.load %arg3[%c0, %c0_0] : memref<36x36xbf16, #tpu.memory_space<vmem>>, vector<36x36xbf16>
    %c0_1 = arith.constant 0 : index
    %c0_2 = arith.constant 0 : index
    %c0_3 = arith.constant 0 : index
    %1 = vector.load %arg2[%c0_1, %c0_2, %c0_3] : memref<1x36x256xbf16, #tpu.memory_space<vmem>>, vector<1x36x256xbf16>
    %2 = vector.shape_cast %1 : vector<1x36x256xbf16> to vector<36x256xbf16>
    %cst = arith.constant dense<0.000000e+00> : vector<36x256xf32>
    %3 = tpu.matmul %0, %2, %cst {dimension_numbers = #tpu.dot_dimension_numbers<[1], [0], [0], [1], [0, 0, 1, 1], [], []>} : vector<36x36xbf16>, vector<36x256xbf16>, vector<36x256xf32> -> vector<36x256xf32>
    %c0_4 = arith.constant 0 : index
    %c0_5 = arith.constant 0 : index
    %4 = vector.load %arg4[%c0_4, %c0_5] : memref<36x1xf32, #tpu.memory_space<vmem>>, vector<36x1xf32>
    %5 = vector.broadcast %4 : vector<36x1xf32> to vector<36x256xf32>
    %6 = arith.addf %3, %5 : vector<36x256xf32>
    %7 = tpu.iota {dimensions = array<i32: 0>} : vector<36x1xi32>
    %c18_i32 = arith.constant 18 : i32
    %8 = vector.broadcast %c18_i32 : i32 to vector<36x1xi32>
    %9 = arith.cmpi slt, %7, %8 : vector<36x1xi32>
    %cst_6 = arith.constant 4.000000e+00 : f32
    %cst_7 = arith.constant 4.000000e+00 : f32
    %10 = vector.broadcast %cst_6 : f32 to vector<36x1xf32>
    %11 = vector.broadcast %cst_7 : f32 to vector<36x1xf32>
    %12 = arith.select %9, %10, %11 : vector<36x1xi1>, vector<36x1xf32>
    %cst_8 = arith.constant 0.000000e+00 : f32
    %13 = vector.broadcast %cst_8 : f32 to vector<36x1xf32>
    %14 = arith.subf %13, %12 : vector<36x1xf32>
    %15 = vector.broadcast %14 : vector<36x1xf32> to vector<36x256xf32>
    %16 = arith.maximumf %15, %6 : vector<36x256xf32>
    %17 = vector.broadcast %12 : vector<36x1xf32> to vector<36x256xf32>
    %18 = arith.minimumf %17, %16 : vector<36x256xf32>
    %c0_9 = arith.constant 0 : index
    %c0_10 = arith.constant 0 : index
    %c0_11 = arith.constant 0 : index
    %19 = vector.load %arg5[%c0_9, %c0_10, %c0_11] : memref<1x36x256xf32, #tpu.memory_space<vmem>>, vector<1x36x256xf32>
    %20 = vector.shape_cast %19 : vector<1x36x256xf32> to vector<36x256xf32>
    %21 = vector.shape_cast %18 : vector<36x256xf32> to vector<1x36x256xf32>
    tpu.vector_store %arg5[%c0_9, %c0_10, %c0_11], %21 {strides = array<i32>} : memref<1x36x256xf32, #tpu.memory_space<vmem>>, vector<1x36x256xf32>,
    return
  }
  func.func @transform_0(%arg0: i32, %arg1: i32) -> (i32, i32, i32) {
    %c0_i32 = arith.constant 0 : i32
    %c0_i32_0 = arith.constant 0 : i32
    return %arg0, %c0_i32, %arg1 : i32, i32, i32
  }
  func.func @transform_1(%arg0: i32, %arg1: i32) -> (i32, i32) {
    %c0_i32 = arith.constant 0 : i32
    %c0_i32_0 = arith.constant 0 : i32
    %c0_i32_1 = arith.constant 0 : i32
    return %c0_i32, %c0_i32_0 : i32, i32
  }
  func.func @transform_2(%arg0: i32, %arg1: i32) -> (i32, i32) {
    %c0_i32 = arith.constant 0 : i32
    %c0_i32_0 = arith.constant 0 : i32
    %c0_i32_1 = arith.constant 0 : i32
    return %c0_i32, %c0_i32_0 : i32, i32
  }
  func.func @transform_3(%arg0: i32, %arg1: i32) -> (i32, i32, i32) {
    %c0_i32 = arith.constant 0 : i32
    %c0_i32_0 = arith.constant 0 : i32
    return %arg0, %c0_i32, %arg1 : i32, i32, i32
  }
}

module attributes {stable_mosaic.version = 11 : i64} {
  func.func @kernel(%arg0: i32, %arg1: i32, %arg2: memref<1x36x256xf32, #tpu.memory_space<vmem>>, %arg3: memref<2x256xf32, #tpu.memory_space<vmem>>, %arg4: memref<1x288x256xbf16, #tpu.memory_space<vmem>>, %arg5: memref<8x288xbf16, #tpu.memory_space<vmem>>, %arg6: memref<1x8x256xf32, #tpu.memory_space<vmem>>) attributes {dimension_semantics = [#tpu.dimension_semantics<parallel>, #tpu.dimension_semantics<parallel>], iteration_bounds = array<i64: 2, 1>, scalar_prefetch = 0 : i64, scratch_operands = 0 : i64, tpu.core_type = #tpu.core_type<tc>, window_params = [{transform_indices = @transform_0, window_bounds = array<i64: 1, 36, 256>}, {transform_indices = @transform_1, window_bounds = array<i64: 2, 256>}, {transform_indices = @transform_2, window_bounds = array<i64: 1, 288, 256>}, {pipeline_mode = #tpu.pipeline_mode<synchronous>, transform_indices = @transform_3, window_bounds = array<i64: 8, 288>}, {transform_indices = @transform_4, window_bounds = array<i64: 1, 8, 256>}]} {
    %c0 = arith.constant 0 : index
    %c0_0 = arith.constant 0 : index
    %0 = vector.load %arg3[%c0, %c0_0] : memref<2x256xf32, #tpu.memory_space<vmem>>, vector<1x256xf32>
    %c1 = arith.constant 1 : index
    %c0_1 = arith.constant 0 : index
    %1 = vector.load %arg3[%c1, %c0_1] : memref<2x256xf32, #tpu.memory_space<vmem>>, vector<1x256xf32>
    %2 = tpu.iota {dimensions = array<i32: 0>} : vector<9x1xi32>
    %c3_i32 = arith.constant 3 : i32
    %3 = vector.broadcast %c3_i32 : i32 to vector<9x1xi32>
    %4 = arith.cmpi sge, %2, %3 : vector<9x1xi32>
    %5 = arith.extui %4 : vector<9x1xi1> to vector<9x1xi32>
    %6 = arith.sitofp %5 : vector<9x1xi32> to vector<9x1xf32>
    %c6_i32 = arith.constant 6 : i32
    %7 = vector.broadcast %c6_i32 : i32 to vector<9x1xi32>
    %8 = arith.cmpi sge, %2, %7 : vector<9x1xi32>
    %9 = arith.extui %8 : vector<9x1xi1> to vector<9x1xi32>
    %10 = arith.sitofp %9 : vector<9x1xi32> to vector<9x1xf32>
    %11 = arith.addf %6, %10 : vector<9x1xf32>
    %12 = arith.sitofp %2 : vector<9x1xi32> to vector<9x1xf32>
    %cst = arith.constant 3.000000e+00 : f32
    %13 = vector.broadcast %cst : f32 to vector<9x1xf32>
    %14 = arith.mulf %13, %11 : vector<9x1xf32>
    %15 = arith.subf %12, %14 : vector<9x1xf32>
    %c0_2 = arith.constant 0 : index
    %c0_3 = arith.constant 0 : index
    %c0_4 = arith.constant 0 : index
    %16 = vector.load %arg2[%c0_2, %c0_3, %c0_4] : memref<1x36x256xf32, #tpu.memory_space<vmem>>, vector<1x9x256xf32>
    %17 = vector.shape_cast %16 : vector<1x9x256xf32> to vector<9x256xf32>
    %c0_5 = arith.constant 0 : index
    %c9 = arith.constant 9 : index
    %c0_6 = arith.constant 0 : index
    %18 = vector.load %arg2[%c0_5, %c9, %c0_6] : memref<1x36x256xf32, #tpu.memory_space<vmem>>, vector<1x9x256xf32>
    %19 = vector.shape_cast %18 : vector<1x9x256xf32> to vector<9x256xf32>
    %cst_7 = arith.constant 1.000000e+00 : f32
    %20 = vector.broadcast %cst_7 : f32 to vector<1x256xf32>
    %21 = arith.subf %0, %20 : vector<1x256xf32>
    %cst_8 = arith.constant 1.000000e+00 : f32
    %22 = vector.broadcast %cst_8 : f32 to vector<9x1xf32>
    %23 = arith.mulf %11, %22 : vector<9x1xf32>
    %24 = vector.broadcast %21 : vector<1x256xf32> to vector<9x256xf32>
    %25 = vector.broadcast %23 : vector<9x1xf32> to vector<9x256xf32>
    %26 = arith.addf %24, %25 : vector<9x256xf32>
    %27 = arith.addf %26, %17 : vector<9x256xf32>
    %cst_9 = arith.constant 1.000000e+00 : f32
    %28 = vector.broadcast %cst_9 : f32 to vector<1x256xf32>
    %29 = arith.subf %1, %28 : vector<1x256xf32>
    %cst_10 = arith.constant 1.000000e+00 : f32
    %30 = vector.broadcast %cst_10 : f32 to vector<9x1xf32>
    %31 = arith.mulf %15, %30 : vector<9x1xf32>
    %32 = vector.broadcast %29 : vector<1x256xf32> to vector<9x256xf32>
    %33 = vector.broadcast %31 : vector<9x1xf32> to vector<9x256xf32>
    %34 = arith.addf %32, %33 : vector<9x256xf32>
    %35 = arith.addf %34, %19 : vector<9x256xf32>
    %36 = math.floor %27 : vector<9x256xf32>
    %37 = math.floor %35 : vector<9x256xf32>
    %38 = arith.subf %27, %36 : vector<9x256xf32>
    %39 = arith.subf %35, %37 : vector<9x256xf32>
    %cst_11 = arith.constant 1.000000e+00 : f32
    %40 = vector.broadcast %cst_11 : f32 to vector<9x256xf32>
    %41 = arith.subf %40, %38 : vector<9x256xf32>
    %cst_12 = arith.constant 1.000000e+00 : f32
    %42 = vector.broadcast %cst_12 : f32 to vector<9x256xf32>
    %43 = arith.subf %42, %39 : vector<9x256xf32>
    %cst_13 = arith.constant -1.000000e+00 : f32
    %44 = vector.broadcast %cst_13 : f32 to vector<9x256xf32>
    %45 = arith.cmpf ogt, %27, %44 : vector<9x256xf32>
    %cst_14 = arith.constant -1.000000e+00 : f32
    %46 = vector.broadcast %cst_14 : f32 to vector<9x256xf32>
    %47 = arith.cmpf ogt, %35, %46 : vector<9x256xf32>
    %48 = arith.andi %45, %47 : vector<9x256xi1>
    %cst_15 = arith.constant 1.600000e+01 : f32
    %49 = vector.broadcast %cst_15 : f32 to vector<9x256xf32>
    %50 = arith.cmpf olt, %27, %49 : vector<9x256xf32>
    %51 = arith.andi %48, %50 : vector<9x256xi1>
    %cst_16 = arith.constant 1.600000e+01 : f32
    %52 = vector.broadcast %cst_16 : f32 to vector<9x256xf32>
    %53 = arith.cmpf olt, %35, %52 : vector<9x256xf32>
    %54 = arith.andi %51, %53 : vector<9x256xi1>
    %cst_17 = arith.constant 0.000000e+00 : f32
    %55 = vector.broadcast %cst_17 : f32 to vector<9x256xf32>
    %56 = arith.cmpf oge, %36, %55 : vector<9x256xf32>
    %cst_18 = arith.constant 1.400000e+01 : f32
    %57 = vector.broadcast %cst_18 : f32 to vector<9x256xf32>
    %58 = arith.cmpf ole, %36, %57 : vector<9x256xf32>
    %cst_19 = arith.constant 0.000000e+00 : f32
    %59 = vector.broadcast %cst_19 : f32 to vector<9x256xf32>
    %60 = arith.cmpf oge, %37, %59 : vector<9x256xf32>
    %cst_20 = arith.constant 1.400000e+01 : f32
    %61 = vector.broadcast %cst_20 : f32 to vector<9x256xf32>
    %62 = arith.cmpf ole, %37, %61 : vector<9x256xf32>
    %cst_21 = arith.constant 0.000000e+00 : f32
    %63 = vector.broadcast %cst_21 : f32 to vector<9x256xf32>
    %64 = arith.andi %54, %56 : vector<9x256xi1>
    %65 = arith.andi %64, %60 : vector<9x256xi1>
    %66 = arith.mulf %41, %43 : vector<9x256xf32>
    %67 = arith.select %65, %66, %63 : vector<9x256xi1>, vector<9x256xf32>
    %68 = arith.andi %54, %56 : vector<9x256xi1>
    %69 = arith.andi %68, %62 : vector<9x256xi1>
    %70 = arith.mulf %41, %39 : vector<9x256xf32>
    %71 = arith.select %69, %70, %63 : vector<9x256xi1>, vector<9x256xf32>
    %72 = arith.andi %54, %58 : vector<9x256xi1>
    %73 = arith.andi %72, %60 : vector<9x256xi1>
    %74 = arith.mulf %38, %43 : vector<9x256xf32>
    %75 = arith.select %73, %74, %63 : vector<9x256xi1>, vector<9x256xf32>
    %76 = arith.andi %54, %58 : vector<9x256xi1>
    %77 = arith.andi %76, %62 : vector<9x256xi1>
    %78 = arith.mulf %38, %39 : vector<9x256xf32>
    %79 = arith.select %77, %78, %63 : vector<9x256xi1>, vector<9x256xf32>
    %c0_22 = arith.constant 0 : index
    %c18 = arith.constant 18 : index
    %c0_23 = arith.constant 0 : index
    %80 = vector.load %arg2[%c0_22, %c18, %c0_23] : memref<1x36x256xf32, #tpu.memory_space<vmem>>, vector<1x9x256xf32>
    %81 = vector.shape_cast %80 : vector<1x9x256xf32> to vector<9x256xf32>
    %c0_24 = arith.constant 0 : index
    %c27 = arith.constant 27 : index
    %c0_25 = arith.constant 0 : index
    %82 = vector.load %arg2[%c0_24, %c27, %c0_25] : memref<1x36x256xf32, #tpu.memory_space<vmem>>, vector<1x9x256xf32>
    %83 = vector.shape_cast %82 : vector<1x9x256xf32> to vector<9x256xf32>
    %cst_26 = arith.constant 5.000000e+00 : f32
    %84 = vector.broadcast %cst_26 : f32 to vector<1x256xf32>
    %85 = arith.subf %0, %84 : vector<1x256xf32>
    %cst_27 = arith.constant 5.000000e+00 : f32
    %86 = vector.broadcast %cst_27 : f32 to vector<9x1xf32>
    %87 = arith.mulf %11, %86 : vector<9x1xf32>
    %88 = vector.broadcast %85 : vector<1x256xf32> to vector<9x256xf32>
    %89 = vector.broadcast %87 : vector<9x1xf32> to vector<9x256xf32>
    %90 = arith.addf %88, %89 : vector<9x256xf32>
    %91 = arith.addf %90, %81 : vector<9x256xf32>
    %cst_28 = arith.constant 5.000000e+00 : f32
    %92 = vector.broadcast %cst_28 : f32 to vector<1x256xf32>
    %93 = arith.subf %1, %92 : vector<1x256xf32>
    %cst_29 = arith.constant 5.000000e+00 : f32
    %94 = vector.broadcast %cst_29 : f32 to vector<9x1xf32>
    %95 = arith.mulf %15, %94 : vector<9x1xf32>
    %96 = vector.broadcast %93 : vector<1x256xf32> to vector<9x256xf32>
    %97 = vector.broadcast %95 : vector<9x1xf32> to vector<9x256xf32>
    %98 = arith.addf %96, %97 : vector<9x256xf32>
    %99 = arith.addf %98, %83 : vector<9x256xf32>
    %100 = math.floor %91 : vector<9x256xf32>
    %101 = math.floor %99 : vector<9x256xf32>
    %102 = arith.subf %91, %100 : vector<9x256xf32>
    %103 = arith.subf %99, %101 : vector<9x256xf32>
    %cst_30 = arith.constant 1.000000e+00 : f32
    %104 = vector.broadcast %cst_30 : f32 to vector<9x256xf32>
    %105 = arith.subf %104, %102 : vector<9x256xf32>
    %cst_31 = arith.constant 1.000000e+00 : f32
    %106 = vector.broadcast %cst_31 : f32 to vector<9x256xf32>
    %107 = arith.subf %106, %103 : vector<9x256xf32>
    %cst_32 = arith.constant -1.000000e+00 : f32
    %108 = vector.broadcast %cst_32 : f32 to vector<9x256xf32>
    %109 = arith.cmpf ogt, %91, %108 : vector<9x256xf32>
    %cst_33 = arith.constant -1.000000e+00 : f32
    %110 = vector.broadcast %cst_33 : f32 to vector<9x256xf32>
    %111 = arith.cmpf ogt, %99, %110 : vector<9x256xf32>
    %112 = arith.andi %109, %111 : vector<9x256xi1>
    %cst_34 = arith.constant 1.600000e+01 : f32
    %113 = vector.broadcast %cst_34 : f32 to vector<9x256xf32>
    %114 = arith.cmpf olt, %91, %113 : vector<9x256xf32>
    %115 = arith.andi %112, %114 : vector<9x256xi1>
    %cst_35 = arith.constant 1.600000e+01 : f32
    %116 = vector.broadcast %cst_35 : f32 to vector<9x256xf32>
    %117 = arith.cmpf olt, %99, %116 : vector<9x256xf32>
    %118 = arith.andi %115, %117 : vector<9x256xi1>
    %cst_36 = arith.constant 0.000000e+00 : f32
    %119 = vector.broadcast %cst_36 : f32 to vector<9x256xf32>
    %120 = arith.cmpf oge, %100, %119 : vector<9x256xf32>
    %cst_37 = arith.constant 1.400000e+01 : f32
    %121 = vector.broadcast %cst_37 : f32 to vector<9x256xf32>
    %122 = arith.cmpf ole, %100, %121 : vector<9x256xf32>
    %cst_38 = arith.constant 0.000000e+00 : f32
    %123 = vector.broadcast %cst_38 : f32 to vector<9x256xf32>
    %124 = arith.cmpf oge, %101, %123 : vector<9x256xf32>
    %cst_39 = arith.constant 1.400000e+01 : f32
    %125 = vector.broadcast %cst_39 : f32 to vector<9x256xf32>
    %126 = arith.cmpf ole, %101, %125 : vector<9x256xf32>
    %cst_40 = arith.constant 0.000000e+00 : f32
    %127 = vector.broadcast %cst_40 : f32 to vector<9x256xf32>
    %128 = arith.andi %118, %120 : vector<9x256xi1>
    %129 = arith.andi %128, %124 : vector<9x256xi1>
    %130 = arith.mulf %105, %107 : vector<9x256xf32>
    %131 = arith.select %129, %130, %127 : vector<9x256xi1>, vector<9x256xf32>
    %132 = arith.andi %118, %120 : vector<9x256xi1>
    %133 = arith.andi %132, %126 : vector<9x256xi1>
    %134 = arith.mulf %105, %103 : vector<9x256xf32>
    %135 = arith.select %133, %134, %127 : vector<9x256xi1>, vector<9x256xf32>
    %136 = arith.andi %118, %122 : vector<9x256xi1>
    %137 = arith.andi %136, %124 : vector<9x256xi1>
    %138 = arith.mulf %102, %107 : vector<9x256xf32>
    %139 = arith.select %137, %138, %127 : vector<9x256xi1>, vector<9x256xf32>
    %140 = arith.andi %118, %122 : vector<9x256xi1>
    %141 = arith.andi %140, %126 : vector<9x256xi1>
    %142 = arith.mulf %102, %103 : vector<9x256xf32>
    %143 = arith.select %141, %142, %127 : vector<9x256xi1>, vector<9x256xf32>
    %144 = tpu.concatenate %67, %71, %75, %79, %131, %135, %139, %143 in 0 : vector<9x256xf32>, vector<9x256xf32>, vector<9x256xf32>, vector<9x256xf32>, vector<9x256xf32>, vector<9x256xf32>, vector<9x256xf32>, vector<9x256xf32> -> vector<72x256xf32>
    %145 = tpu.concatenate %144, %144, %144, %144 in 0 : vector<72x256xf32>, vector<72x256xf32>, vector<72x256xf32>, vector<72x256xf32> -> vector<288x256xf32>
    %c0_41 = arith.constant 0 : index
    %c0_42 = arith.constant 0 : index
    %c0_43 = arith.constant 0 : index
    %146 = vector.load %arg4[%c0_41, %c0_42, %c0_43] : memref<1x288x256xbf16, #tpu.memory_space<vmem>>, vector<1x288x256xbf16>
    %147 = vector.shape_cast %146 : vector<1x288x256xbf16> to vector<288x256xbf16>
    %148 = arith.extf %147 : vector<288x256xbf16> to vector<288x256xf32>
    %149 = arith.mulf %145, %148 : vector<288x256xf32>
    %150 = arith.truncf %149 : vector<288x256xf32> to vector<288x256xbf16>
    %c0_44 = arith.constant 0 : index
    %c0_45 = arith.constant 0 : index
    %151 = vector.load %arg5[%c0_44, %c0_45] : memref<8x288xbf16, #tpu.memory_space<vmem>>, vector<8x288xbf16>
    %cst_46 = arith.constant dense<0.000000e+00> : vector<8x256xf32>
    %152 = tpu.matmul %151, %150, %cst_46 {dimension_numbers = #tpu.dot_dimension_numbers<[1], [0], [0], [1], [0, 0, 1, 1], [], []>} : vector<8x288xbf16>, vector<288x256xbf16>, vector<8x256xf32> -> vector<8x256xf32>
    %c0_47 = arith.constant 0 : index
    %c0_48 = arith.constant 0 : index
    %c0_49 = arith.constant 0 : index
    %153 = vector.load %arg6[%c0_47, %c0_48, %c0_49] : memref<1x8x256xf32, #tpu.memory_space<vmem>>, vector<1x8x256xf32>
    %154 = vector.shape_cast %153 : vector<1x8x256xf32> to vector<8x256xf32>
    %155 = vector.shape_cast %152 : vector<8x256xf32> to vector<1x8x256xf32>
    tpu.vector_store %arg6[%c0_47, %c0_48, %c0_49], %155 {strides = array<i32>} : memref<1x8x256xf32, #tpu.memory_space<vmem>>, vector<1x8x256xf32>,
    return
  }
  func.func @transform_0(%arg0: i32, %arg1: i32) -> (i32, i32, i32) {
    %c0_i32 = arith.constant 0 : i32
    %c0_i32_0 = arith.constant 0 : i32
    return %arg0, %c0_i32, %arg1 : i32, i32, i32
  }
  func.func @transform_1(%arg0: i32, %arg1: i32) -> (i32, i32) {
    %c0_i32 = arith.constant 0 : i32
    %c0_i32_0 = arith.constant 0 : i32
    return %c0_i32, %arg1 : i32, i32
  }
  func.func @transform_2(%arg0: i32, %arg1: i32) -> (i32, i32, i32) {
    %c0_i32 = arith.constant 0 : i32
    %c0_i32_0 = arith.constant 0 : i32
    return %arg0, %c0_i32, %arg1 : i32, i32, i32
  }
  func.func @transform_3(%arg0: i32, %arg1: i32) -> (i32, i32) {
    %c0_i32 = arith.constant 0 : i32
    %c0_i32_0 = arith.constant 0 : i32
    %c0_i32_1 = arith.constant 0 : i32
    return %c0_i32, %c0_i32_0 : i32, i32
  }
  func.func @transform_4(%arg0: i32, %arg1: i32) -> (i32, i32, i32) {
    %c0_i32 = arith.constant 0 : i32
    %c0_i32_0 = arith.constant 0 : i32
    return %arg0, %c0_i32, %arg1 : i32, i32, i32
  }
}

</mosaic_0001>

<bundles_post_ra>
// kernel: deform_conv_with_offset_bound_minmax.2
= control target key start
LH: loop header
LB: loop body
LE: loop exit
PB: predicated region body
PF: predicated region fallthrough
CT: control target
= control target key end

     0   :  { %s607_s12 = smov 0   ;;  %s609_s13 = smov 0   ;;  %s680_s0 = inlined_call_operand.vmem [shape: bf16[2,36,256], index: 0, kind: input, shape index: {}]   ;;  %s681_s1 = inlined_call_operand.vmem [shape: bf16[36,36], index: 1, kind: input, shape index: {}]   ;;  %s682_s2 = inlined_call_operand.vmem [shape: f32[36,1], index: 2, kind: input, shape index: {}]   ;;  %s683_s3 = inlined_call_operand.vmem [shape: f32[2,36,256], index: 3, kind: output, shape index: {}]  }
   0x1   :  { %s611_s14 = smov 0  }
   0x2 LB: > { %s25_s15 = sadd.s32 1, %s580_s13  ;;  %p488_p0 = scmp.ge.s32.totalorder %s584_s14, 1  ;;  %s584_s14 = sphi %s611_s14, %s13_s14   ;;  %s580_s13 = sphi %s609_s13, %s685_s13   ;;  %s576_s12 = sphi %s607_s12, %s684_s12  }
   0x3   : > { %p27_p1 = scmp.ge.s32.totalorder %s25_s15, 2  ;;  %p158_p2 = scmp.lt.s32.totalorder %s584_s14, 3 }
   0x5   : > { %s687_s15 = smov (%p27_p1, %s25_s15), 0  ;;  %p159_p3 = pnand %p488_p0, %p158_p2 }
   0x6   : > { %p191_p4 = scmp.lt.s32.totalorder (!%p159_p3), %s576_s12, 1  ;;  %v586_v0 = vmov (!%p159_p3), 0   ;;  %v221_v1 = vld [vmem:[%s682_s2] sm:$0xff] (!%p159_p3)  ;;  %v223_v2 = vld [vmem:[%s682_s2 + $0x10] sm:$0xff] (!%p159_p3)  ;;  %v222_v3 = vld [vmem:[%s682_s2 + $0x8] sm:$0xff] (!%p159_p3)  ;;  %vm299_vm0 = vcmask (!%p159_p3), 1041408  }
   0x7   : > { %162 = sbr.rel (%p159_p3) target bundleno = 257 (0x101), region = 32  ;;  %338 = vmatprep.mubr.bf16.mxu0 (!%p159_p3), %v586_v0  ;;  %348 = vmatprep.mubr.bf16.mxu1 (!%p159_p3), %v586_v0  ;;  %v224_v4 = vld [vmem:[%s682_s2 + $0x18] sm:$0xff] (!%p159_p3)  ;;  %v225_v9 = vld [vmem:[%s682_s2 + $0x20] sm:$0xf] (!%p159_p3)  ;;  %v560_v15 = vld [vmem:[%s681_s1 + $0x8] sm:$0xff] (!%p159_p3)   ;;  %vm289_vm1 = vcmask (!%p159_p3), 293888  }
   0x8   : > { %549 = vset.pattern.permute.xlu0 (!%p159_p3), %v586_v0  ;;  %550 = vset.pattern.permute.xlu1 (!%p159_p3), %v586_v0  ;;  %v559_v14 = vld [vmem:[%s681_s1] sm:$0xff] (!%p159_p3)   ;;  %v561_v16 = vld [vmem:[%s681_s1 + $0x10] ss:$0 sps:$4 sm:$0x33] (!%p159_p3)  }
   0x9   : > { %228 = vperm.xlu0 (!%p159_p3), %549, %v221_v1   ;;  %238 = vperm.xlu1 (!%p159_p3), %550, %v223_v2  }
   0xd   : > { %233 = vperm.xlu0 (!%p159_p3), %549, %v222_v3   ;;  %243 = vperm.xlu1 (!%p159_p3), %550, %v224_v4  }
   0xe   : > { %s689_s12 = smov (!%p191_p4, %s576_s12), 1 }
   0xf   : > { %s522_s20 = smul.u32 40, %s689_s12 }
  0x10   : > { %s523_s9 = smul.u32 80, %s689_s12 }
  0x11   : > { %s198_s27 = scalar_lea.vmem %s680_s0, %s522_s20  ;;  %248 = vperm.xlu0 %549, %v225_v9  }
  0x12   : > { %v551_v5 = vld [vmem:[%s198_s27 + $0x4] ss:$8 sps:$4 sm:$0xff]   ;;  %v553_v6 = vld [vmem:[%s198_s27] ss:$8 sps:$4 sm:$0xff]   ;;  %v554_v7 = vld [vmem:[%s198_s27 + $0x14] ss:$8 sps:$4 sm:$0xff]   ;;  %s659_s16 = scalar_lea.vmem %s683_s3, %s523_s9 }
  0x13   : > { %306 = vmatprep.subr.bf16.mxu0 %v551_v5  ;;  %516 = vmatprep.subr.bf16.mxu1 %v551_v5  ;;  %v220_v8 = vld [vmem:[%s198_s27 + $0x20] sm:$0x33]  ;;  %v556_v10 = vld [vmem:[%s198_s27 + $0x10] ss:$8 sps:$4 sm:$0xff]  }
  0x14   : > { %307 = vmatpush1.bf16.msra.mxu0 %v553_v6  ;;  %519 = vmatpush1.bf16.msra.mxu1 %v553_v6  ;;  %v499_v11 = vcombine.high %v220_v8, %v220_v8  ;;  %v498_v12 = vcombine.low %v220_v8, %v220_v8 }
  0x15   : > { %308 = vmatprep.subr.bf16.mxu0 %v554_v7  ;;  %517 = vmatprep.subr.bf16.mxu1 %v554_v7 }
  0x16   : > { %v301_v13 = vsel %vm299_vm0, %v498_v12, 0 }
  0x18   : > { %309 = vmatpush1.bf16.msra.mxu0 %v556_v10  ;;  %520 = vmatpush1.bf16.msra.mxu1 %v556_v10 }
  0x19   : > { %500 = vmatprep.subr.msk.bf16.mxu0 %vm299_vm0, %v499_v11  ;;  %518 = vmatprep.subr.msk.bf16.mxu1 %vm299_vm0, %v499_v11 }
  0x1c   : > { %311 = vmatpush1.bf16.msra.mxu0 %v301_v13  ;;  %521 = vmatpush1.bf16.msra.mxu1 %v301_v13 }
  0x1f   : > { %501 = vmatmul.mubr.msk.bf16.vlgmr.msra.gmra.mrb[0].mxu0 %vm289_vm1, %v559_v14  ;;  %502 = vmatmul.mubr.msk.bf16.vlgmr.msra.gmra.mrb[0].mxu1 %vm289_vm1, %v560_v15 }
  0x20   : > { %358 = vmatprep.mubr.bf16.mxu1 %v586_v0 }
  0x27   : > { %503 = vmatmul.mubr.msk.bf16.gmra.mrb[4].mxu1 %vm289_vm1, %v561_v16 }
  0x88   : > { %v229_v17 = vpop.permute.xlu0 %228  ;;  %v239_v18 = vpop.permute.xlu1 %238 }
  0x8c   : > { %v234_v19 = vpop.permute.xlu0 %233  ;;  %v244_v20 = vpop.permute.xlu1 %243 }
  0x90   : > { %v249_v45 = vpop.permute.xlu0 %248 }
  0xf2   : > { %v340_v21 = vpop.f32.mrb[0].mxu0  ;;  %v350_v22 = vpop.f32.mrb[0].mxu1 }
  0xf3   : > { %v341_v23 = vadd.f32 %v340_v21, %v229_v17  ;;  %v351_v24 = vadd.f32 %v350_v22, %v239_v18  ;;  %v342_v25 = vpop.f32.mrb[1].mxu0  ;;  %v352_v26 = vpop.f32.mrb[1].mxu1 }
  0xf4   : > { %v343_v27 = vadd.f32 %v342_v25, %v229_v17  ;;  %v353_v28 = vadd.f32 %v352_v26, %v239_v18  ;;  %v344_v29 = vpop.f32.mrb[2].mxu0  ;;  %v354_v30 = vpop.f32.mrb[2].mxu1 }
  0xf5   : > { %v504_v31 = vclamps-f32 %v341_v23, 4.0  ;;  %v508_v32 = vclamps-f32 %v351_v24, 4.0  ;;  %v345_v33 = vadd.f32 %v344_v29, %v234_v19  ;;  %v355_v34 = vadd.f32 %v354_v30, %v244_v20  ;;  %v346_v35 = vpop.f32.mrb[3].mxu0  ;;  %v356_v36 = vpop.f32.mrb[3].mxu1 }
  0xf6   : > { %v505_v37 = vclamps-f32 %v343_v27, 4.0  ;;  %v509_v38 = vclamps-f32 %v353_v28, 4.0  ;;  %v347_v39 = vadd.f32 %v346_v35, %v234_v19  ;;  %v357_v40 = vadd.f32 %v356_v36, %v244_v20 }
  0xf7   : > { %387 = vst [vmem:[%s659_s16] sm:$0xff] %v504_v31  ;;  %391 = vst [vmem:[%s659_s16 + $0x20] sm:$0xff] %v508_v32  ;;  %v506_v41 = vclamps-f32 %v345_v33, 4.0  ;;  %v510_v42 = vclamps-f32 %v355_v34, 4.0 }
  0xf8   : > { %388 = vst [vmem:[%s659_s16 + $0x8] sm:$0xff] %v505_v37  ;;  %392 = vst [vmem:[%s659_s16 + $0x28] sm:$0xff] %v509_v38  ;;  %v507_v43 = vclamps-f32 %v347_v39, 4.0  ;;  %v511_v44 = vclamps-f32 %v357_v40, 4.0 }
  0xf9   : > { %389 = vst [vmem:[%s659_s16 + $0x10] sm:$0xff] %v506_v41  ;;  %393 = vst [vmem:[%s659_s16 + $0x30] sm:$0xff] %v510_v42 }
  0xfa   : > { %390 = vst [vmem:[%s659_s16 + $0x18] sm:$0xff] %v507_v43  ;;  %394 = vst [vmem:[%s659_s16 + $0x38] sm:$0xff] %v511_v44  ;;  %v360_v46 = vpop.f32.mrb[4].mxu1 }
  0xfb   : > { %v361_v47 = vadd.f32 %v360_v46, %v249_v45  ;;  %v362_v48 = vpop.f32.mrb[5].mxu1 }
  0xfc   : > { %v363_v49 = vadd.f32 %v362_v48, %v249_v45  ;;  %v364_v50 = vpop.f32.mrb[6].mxu1 }
  0xfd   : > { %v512_v51 = vclamps-f32 %v361_v47, 4.0  ;;  %v365_v52 = vpop.f32.mrb[7].mxu1 }
  0xfe   : > { %v513_v53 = vclamps-f32 %v363_v49, 4.0 }
  0xff   : > { %395 = vst [vmem:[%s659_s16 + $0x40] sm:$0xf] %v512_v51 }
 0x100   : > { %396 = vst [vmem:[%s659_s16 + $0x48] sm:$0xf] %v513_v53 }
 0x101 PF: > { %s13_s14 = sadd.s32 1, %s584_s14   ;;  %s684_s12 = smov %s580_s13 }
 0x102   : > { %p10_p5 = scmp.ge.s32.totalorder %s13_s14, 4   ;;  %s685_s13 = smov %s687_s15 }
 0x104   :  { %12 = sbr.rel (!%p10_p5) target bundleno = 2 (0x2), region = 62 }

// kernel: deform_conv_with_offset_bound_minmax.3
= control target key start
LH: loop header
LB: loop body
LE: loop exit
PB: predicated region body
PF: predicated region fallthrough
CT: control target
= control target key end

     0   :  { %s1376_s15 = smov 0   ;;  %s1378_s16 = smov 0   ;;  %s2369_s0 = inlined_call_operand.vmem [shape: f32[2,36,256], index: 0, kind: input, shape index: {}]   ;;  %s2370_s1 = inlined_call_operand.vmem [shape: f32[2,256], index: 1, kind: input, shape index: {}]   ;;  %s2371_s2 = inlined_call_operand.vmem [shape: bf16[2,288,256], index: 2, kind: input, shape index: {}]   ;;  %s2372_s3 = inlined_call_operand.vmem [shape: bf16[8,288], index: 3, kind: input, shape index: {}]   ;;  %s2373_s4 = inlined_call_operand.vmem [shape: f32[2,8,256], index: 4, kind: output, shape index: {}]  }
   0x1   :  { %s1380_s17 = smov 0  }
   0x2 LB: > { %s26_s18 = sadd.s32 1, %s1343_s16  ;;  %p1272_p0 = scmp.ge.s32.totalorder %s1347_s17, 1  ;;  %s1347_s17 = sphi %s1380_s17, %s14_s17   ;;  %s1343_s16 = sphi %s1378_s16, %s2479_s16   ;;  %s1339_s15 = sphi %s1376_s15, %s2478_s15  }
   0x3   : > { %p28_p1 = scmp.ge.s32.totalorder %s26_s18, 2  ;;  %p211_p2 = scmp.lt.s32.totalorder %s1347_s17, 3 }
   0x5   : > { %s2481_s18 = smov (%p28_p1, %s26_s18), 0  ;;  %p212_p3 = pnand %p1272_p0, %p211_p2 }
   0x6   : > { %p260_p4 = scmp.lt.s32.totalorder (!%p212_p3), %s1339_s15, 1  ;;  %v296_v0 = vld [vmem:[%s2370_s1] ss:$2 sm:$0x3] (!%p212_p3)  ;;  %v299_v1 = vlaneseq (!%p212_p3)  ;;  %v1349_v7 = vmov (!%p212_p3), 0.0   ;;  %vm2374_vm2 = vcmask (!%p212_p3), 1046528  }
   0x7   : > { %215 = sbr.rel (%p212_p3) target bundleno = 380 (0x17c), region = 36  ;;  %v1277_v2 = vld [vmem:[%s2370_s1 + $0x1] ss:$2 sm:$0x3] (!%p212_p3)  ;;  %v1402_v4 = vadd.f32 (!%p212_p3), -1.0, %v296_v0  ;;  %v1283_v18 = vadd.f32 (!%p212_p3), -5.0, %v296_v0 }
   0x8   : > { %v300_v3 = vshrl.u32 (!%p212_p3), %v299_v1, 7  ;;  %v1404_v5 = vadd.f32 (!%p212_p3), -1.0, %v1277_v2  ;;  %v1284_v19 = vadd.f32 (!%p212_p3), -5.0, %v1277_v2 }
   0xa   : > { %v301_v6 = vadd.s32 (!%p212_p3), 8, %v300_v3  ;;  %vm302_vm0 = vcmp.ge.s32.totalorder (!%p212_p3), %v300_v3, 3  ;;  %vm308_vm1 = vcmp.ge.s32.totalorder (!%p212_p3), %v300_v3, 6  ;;  %v1407_v10 = vsub.s32 (!%p212_p3), 1, %v300_v3 }
   0xb   : > { %v1278_v8 = vsel (!%p212_p3), %vm302_vm0, 1.0, %v1349_v7  ;;  %v1279_v9 = vsel (!%p212_p3), %vm308_vm1, 1.0, %v1349_v7  ;;  %v316_v12 = vcvt.s32.f32 (!%p212_p3), %v300_v3  ;;  %v1427_v25 = vsub.s32 (!%p212_p3), 0, %v300_v3 }
   0xc   : > { %v1414_v11 = vadd.f32 (!%p212_p3), %v1279_v9, %v1278_v8  ;;  %v317_v13 = vcvt.s32.f32 (!%p212_p3), %v301_v6  ;;  %v339_v16 = vrot.slane (!%p212_p3), %v1402_v4, %v1407_v10  ;;  %v359_v17 = vrot.slane (!%p212_p3), %v1404_v5, %v1407_v10 }
   0xd   : > { %v1435_v34 = vrot.slane (!%p212_p3), %v1283_v18, %v1427_v25  ;;  %v1439_v37 = vrot.slane (!%p212_p3), %v1283_v18, %v1407_v10  ;;  %v1442_v38 = vrot.slane (!%p212_p3), %v1284_v19, %v1427_v25  ;;  %vm719_vm0 = vcmask (!%p212_p3), 1040384  }
   0xe   : > { %s2483_s15 = smov (!%p260_p4, %s1339_s15), 1  ;;  %v318_v20 = vmul.f32 3.0, %v1414_v11  ;;  %v1423_v21 = vadd.f32 -6.0, %v317_v13  ;;  %v343_v26 = vadd.f32 %v339_v16, %v1414_v11  ;;  %v345_v27 = vadd.f32 2.0, %v339_v16 }
   0xf   : > { %s1294_s23 = smul.u32 80, %s2483_s15  ;;  %v1471_v50 = vadd.f32 10.0, %v1435_v34  ;;  %v1489_v55 = vadd.f32 10.0, %v1439_v37  ;;  %v1495_v57 = vrot.slane %v1284_v19, %v1407_v10  ;;  %v335_v9 = vrot.slane %v1402_v4, %v1427_v25  ;;  %s1291_s9 = sshll.u32 %s2483_s15, 4 }
  0x10   : > { %v1430_v29 = vsub.f32 %v316_v12, %v318_v20  ;;  %v365_v30 = vadd.f32 %v1423_v21, %v359_v17  ;;  %v1449_v41 = vmul.f32 5.0, %v1423_v21  ;;  %s1295_s27 = smul.u32 288, %s2483_s15  ;;  %v355_v10 = vrot.slane %v1404_v5, %v1427_v25  ;;  %s293_s12 = scalar_lea.vmem %s2373_s4, %s1291_s9 }
  0x11   : > { %s1412_s26 = scalar_lea.vmem %s2369_s0, %s1294_s23 }
  0x12   : > { %v325_v14 = vld [vmem:[%s1412_s26 + $0x18] sm:$0x1]  ;;  %v327_v15 = vld [vmem:[%s1412_s26 + $0x18] sm:$0xfe]  ;;  %v323_v22 = vld [vmem:[%s1412_s26 + $0x8] sm:$0xff]  ;;  %v363_v35 = vadd.f32 %v359_v17, %v1430_v29  ;;  %s1476_s30 = scalar_lea.vmem %s2371_s2, %s1295_s27  ;;  %v1492_v56 = vmul.f32 5.0, %v1430_v29  ;;  %v1509_v61 = vadd.f32 %v1442_v38, %v1449_v41  ;;  %v1622_v48 = vadd.f32 %v1495_v57, %v1449_v41 }
  0x13   : > { %v329_v23 = vld [vmem:[%s1412_s26 + $0x28] sm:$0x3]  ;;  %v374_v24 = vrot.slane %v327_v15, 1  ;;  %v347_v31 = vadd.f32 %v343_v26, %v323_v22  ;;  %v349_v32 = vadd.f32 %v345_v27, %v325_v14  ;;  %v326_v58 = vld [vmem:[%s1412_s26 + $0x10] sm:$0xfe]  ;;  %v1524_v1 = vld [vmem:[%s1476_s30] sm:$0xff]  ;;  %v342_v22 = vadd.f32 %v335_v9, %v1414_v11 }
  0x14   : > { %v375_v28 = vrot.slane %v329_v23, 1  ;;  %v328_v62 = vld [vmem:[%s1412_s26 + $0x20] sm:$0x3]  ;;  %v1527_v2 = vld [vmem:[%s1476_s30 + $0x8] sm:$0xff]  ;;  %v371_v12 = vrot.slane %v326_v58, 1  ;;  %v868_v4 = vunpack.c.h.bf16 %v1524_v1  ;;  %v344_v23 = vadd.f32 2.0, %v335_v9 }
  0x15   : > { %v1444_v39 = vfloor.f32 %v347_v31  ;;  %v1446_v40 = vfloor.f32 %v349_v32  ;;  %vm412_vm3 = vcmp.gt.f32.partialorder %v349_v32, -1.0  ;;  %vm410_vm4 = vcmp.gt.f32.partialorder %v347_v31, -1.0  ;;  %v322_v17 = vld [vmem:[%s1412_s26] sm:$0xff]  ;;  %v324_v18 = vld [vmem:[%s1412_s26 + $0x10] sm:$0x1]  ;;  %v1661_v63 = vld [vmem:[%s1476_s30 + $0x18] sm:$0xff] }
  0x16   : > { %v376_v33 = vsel %vm2374_vm2, %v374_v24, %v375_v28  ;;  %v384_v36 = vadd.f32 %v375_v28, %v365_v30  ;;  %vm422_vm7 = vcmp.lt.f32.partialorder %v347_v31, 16.0  ;;  %vm424_vm8 = vcmp.lt.f32.partialorder %v349_v32, 16.0 }
  0x17   : > { %v382_v42 = vadd.f32 %v376_v33, %v363_v35  ;;  %v1455_v44 = vsub.f32 %v347_v31, %v1444_v39  ;;  %v1458_v45 = vsub.f32 %v349_v32, %v1446_v40  ;;  %vm438_vm15 = vcmp.ge.f32.partialorder %v1444_v39, 0.0 }
  0x18   : > { %v1452_v43 = vfloor.f32 %v384_v36  ;;  %vm416_vm5 = vcmp.gt.f32.partialorder %v384_v36, -1.0  ;;  %vm432_vm13 = vcmp.lt.f32.partialorder %v384_v36, 16.0  ;;  %v372_v13 = vrot.slane %v328_v62, 1 }
  0x19   : > { %vm420_vm6 = vmand %vm412_vm3, %vm416_vm5  ;;  %v1460_v46 = vfloor.f32 %v382_v42  ;;  %vm414_vm9 = vcmp.gt.f32.partialorder %v382_v42, -1.0  ;;  %vm430_vm11 = vcmp.lt.f32.partialorder %v382_v42, 16.0  ;;  %v404_v49 = vsub.f32 1.0, %v1458_v45 }
  0x1a   : > { %v1463_v47 = vsub.f32 %v384_v36, %v1452_v43  ;;  %vm1465_vm10 = vmand %vm420_vm6, %vm424_vm8  ;;  %v402_v52 = vsub.f32 1.0, %v1455_v44  ;;  %vm440_vm3 = vcmp.ge.f32.partialorder %v1446_v40, 0.0  ;;  %vm442_vm5 = vcmp.le.f32.partialorder %v1444_v39, 14.0 }
  0x1b   : > { %vm418_vm12 = vmand %vm410_vm4, %vm414_vm9  ;;  %v398_v51 = vsub.f32 %v382_v42, %v1460_v46  ;;  %vm446_vm6 = vcmp.ge.f32.partialorder %v1460_v46, 0.0  ;;  %vm448_vm8 = vcmp.ge.f32.partialorder %v1452_v43, 0.0  ;;  %vm450_vm9 = vcmp.le.f32.partialorder %v1460_v46, 14.0 }
  0x1c   : > { %v408_v53 = vsub.f32 1.0, %v1463_v47  ;;  %vm426_vm14 = vmand %vm418_vm12, %vm422_vm7  ;;  %vm444_vm7 = vcmp.le.f32.partialorder %v1446_v40, 14.0  ;;  %v476_v8 = vmul.f32 %v404_v49, %v1463_v47  ;;  %v870_v5 = vunpack.c.h.bf16 %v1527_v2 }
  0x1d   : > { %vm1483_vm1 = vmand %vm426_vm14, %vm430_vm11  ;;  %v406_v59 = vsub.f32 1.0, %v398_v51  ;;  %vm452_vm11 = vcmp.le.f32.partialorder %v1452_v43, 14.0  ;;  %v474_v7 = vmul.f32 %v402_v52, %v398_v51  ;;  %v1559_v16 = vmul.f32 %v398_v51, %v1455_v44 }
  0x1e   : > { %vm1501_vm4 = vmand %vm1465_vm10, %vm432_vm13  ;;  %v464_v0 = vmul.f32 %v408_v53, %v404_v49  ;;  %v1556_v15 = vmul.f32 %v408_v53, %v1458_v45  ;;  %v362_v26 = vadd.f32 %v355_v10, %v1430_v29  ;;  %v364_v27 = vadd.f32 %v1423_v21, %v355_v10 }
  0x1f   : > { %vm1519_vm10 = vmand %vm1483_vm1, %vm438_vm15  ;;  %v462_v6 = vmul.f32 %v406_v59, %v402_v52  ;;  %v373_v28 = vsel %vm2374_vm2, %v371_v12, %v372_v13  ;;  %v490_v31 = vmul.f32 %v406_v59, %v1455_v44  ;;  %v346_v33 = vadd.f32 %v342_v22, %v322_v17  ;;  %v1610_v44 = vld [vmem:[%s1476_s30 + $0x10] sm:$0xff] }
  0x20   : > { %vm1534_vm12 = vmand %vm1501_vm4, %vm440_vm3  ;;  %v348_v35 = vadd.f32 %v344_v23, %v324_v18  ;;  %v504_v29 = vmul.f32 %v1463_v47, %v1458_v45  ;;  %v381_v39 = vadd.f32 %v373_v28, %v362_v26  ;;  %v1607_v42 = vadd.f32 %v372_v13, %v364_v27  ;;  %v510_v23 = vld [vmem:[%s1412_s26 + $0x28] sm:$0xfc]  ;;  %v512_v27 = vld [vmem:[%s1412_s26 + $0x38] sm:$0x7] }
  0x21   : > { %vm458_vm13 = vmand %vm1519_vm10, %vm446_vm6  ;;  %v1628_v47 = vfloor.f32 %v346_v33  ;;  %v867_v54 = vunpack.c.l.bf16 %v1524_v1  ;;  %v869_v62 = vunpack.c.l.bf16 %v1527_v2  ;;  %v874_v14 = vunpack.c.h.bf16 %v1661_v63  ;;  %v514_v28 = vld [vmem:[%s1412_s26 + $0x38] sm:$0xf8] }
  0x22   : > { %vm1551_vm14 = vmand %vm1534_vm12, %vm448_vm8  ;;  %v1565_v19 = vsel %vm458_vm13, %v462_v6, 0.0  ;;  %v1630_v49 = vfloor.f32 %v348_v35  ;;  %v1641_v41 = vfloor.f32 %v381_v39  ;;  %v1644_v53 = vfloor.f32 %v1607_v42 }
  0x23   : > { %v468_v20 = vsel %vm1551_vm14, %v464_v0, 0.0  ;;  %vm470_vm15 = vmand %vm1519_vm10, %vm450_vm9  ;;  %v940_v36 = vmul.f32 %v868_v4, %v1565_v19  ;;  %v872_v0 = vunpack.c.h.bf16 %v1610_v44  ;;  %v393_v9 = vsub.f32 %v346_v33, %v1628_v47 }
  0x24   : > { %vm1578_vm3 = vmand %vm1534_vm12, %vm452_vm11  ;;  %v478_v25 = vsel %vm470_vm15, %v474_v7, 0.0  ;;  %v1676_v7 = vsub.f32 %v381_v39, %v1641_v41  ;;  %v1683_v10 = vsub.f32 %v348_v35, %v1630_v49  ;;  %v1687_v43 = vsub.f32 %v1607_v42, %v1644_v53 }
  0x25   : > { %vm1589_vm10 = vmand %vm1483_vm1, %vm442_vm5  ;;  %v1594_v32 = vrot.slane %v478_v25, 7  ;;  %v480_v58 = vsel %vm1578_vm3, %v476_v8, 0.0  ;;  %vm413_vm14 = vcmp.gt.f32.partialorder %v381_v39, -1.0  ;;  %vm415_vm15 = vcmp.gt.f32.partialorder %v1607_v42, -1.0 }
  0x26   : > { %vm1600_vm12 = vmand %vm1501_vm4, %vm444_vm7  ;;  %v724_v12 = vrot.slane %v480_v58, 7  ;;  %vm421_vm3 = vcmp.lt.f32.partialorder %v346_v33, 16.0  ;;  %v401_v17 = vsub.f32 1.0, %v393_v9  ;;  %v403_v18 = vsub.f32 1.0, %v1683_v10 }
  0x27   : > { %vm1616_vm1 = vmand %vm1589_vm10, %vm446_vm6  ;;  %v1626_v45 = vsel %vm719_vm0, %v468_v20, %v1594_v32  ;;  %v407_v20 = vsub.f32 1.0, %v1687_v43  ;;  %vm431_vm2 = vcmp.lt.f32.partialorder %v1607_v42, 16.0  ;;  %vm441_vm13 = vcmp.le.f32.partialorder %v1628_v47, 14.0 }
  0x28   : > { %vm1636_vm4 = vmand %vm1600_vm12, %vm448_vm8  ;;  %v942_v52 = vmul.f32 %v870_v5, %v1626_v45  ;;  %v494_v59 = vsel %vm1616_vm1, %v490_v31, 0.0  ;;  %v405_v5 = vsub.f32 1.0, %v1676_v7  ;;  %vm423_vm1 = vcmp.lt.f32.partialorder %v348_v35, 16.0 }
  0x29   : > { %vm1655_vm6 = vmand %vm1589_vm10, %vm450_vm9  ;;  %v496_v3 = vsel %vm1636_vm4, %v1556_v15, 0.0  ;;  %vm409_vm9 = vcmp.gt.f32.partialorder %v346_v33, -1.0  ;;  %v736_v13 = vrot.slane %v494_v59, 6  ;;  %vm437_vm10 = vcmp.ge.f32.partialorder %v1628_v47, 0.0 }
  0x2a   : > { %vm1671_vm8 = vmand %vm1600_vm12, %vm452_vm11  ;;  %v1012_v6 = vpack.c.bf16 %v942_v52, %v940_v36  ;;  %v506_v8 = vsel %vm1655_vm6, %v1559_v16, 0.0  ;;  %vm411_vm11 = vcmp.gt.f32.partialorder %v348_v35, -1.0  ;;  %v739_v16 = vrot.slane %v496_v3, 6 }
  0x2b   : > { %v508_v15 = vsel %vm1671_vm8, %v504_v29, 0.0  ;;  %v1693_v4 = vrot.slane %v506_v8, 5  ;;  %vm417_vm12 = vmand %vm409_vm9, %vm413_vm14  ;;  %vm429_vm6 = vcmp.lt.f32.partialorder %v381_v39, 16.0  ;;  %vm439_vm9 = vcmp.ge.f32.partialorder %v1630_v49, 0.0  ;;  %v516_v29 = vld [vmem:[%s1412_s26 + $0x48] sm:$0xf] }
  0x2c   : > { %1063 = vmatprep.subr.bf16.mxu1 %v1012_v6  ;;  %vm419_vm4 = vmand %vm411_vm11, %vm415_vm15  ;;  %v1700_v22 = vrot.slane %v508_v15, 5  ;;  %vm443_vm7 = vcmp.le.f32.partialorder %v1630_v49, 14.0  ;;  %vm445_vm11 = vcmp.ge.f32.partialorder %v1641_v41, 0.0  ;;  %vm447_vm15 = vcmp.ge.f32.partialorder %v1644_v53, 0.0 }
  0x2d   : > { %vm425_vm8 = vmand %vm417_vm12, %vm421_vm3  ;;  %vm449_vm3 = vcmp.le.f32.partialorder %v1641_v41, 14.0  ;;  %vm451_vm12 = vcmp.le.f32.partialorder %v1644_v53, 14.0  ;;  %v461_v25 = vmul.f32 %v405_v5, %v401_v17  ;;  %v725_v26 = vsel %vm719_vm0, %v1594_v32, %v724_v12 }
  0x2e   : > { %vm427_vm14 = vmand %vm419_vm4, %vm423_vm1  ;;  %v463_v31 = vmul.f32 %v407_v20, %v403_v18  ;;  %v473_v33 = vmul.f32 %v401_v17, %v1676_v7  ;;  %v475_v35 = vmul.f32 %v403_v18, %v1687_v43  ;;  %vm2409_vm4 = vcmask 1041408  }
  0x2f   : > { %vm1710_vm5 = vmand %vm425_vm8, %vm429_vm6  ;;  %v740_v21 = vsel %vm2409_vm4, %v736_v13, %v739_v16  ;;  %vm2413_vm8 = vcmask 1042432   ;;  %v1746_v42 = vmul.f32 5.0, %v1414_v11  ;;  %v543_v40 = vrot.slane %v510_v23, 2 }
  0x30   : > { %vm1722_vm1 = vmand %vm427_vm14, %vm431_vm2  ;;  %v1743_v39 = vsel %vm2413_vm8, %v740_v21, %v1693_v4  ;;  %v489_v52 = vmul.f32 %v405_v5, %v393_v9  ;;  %v544_v58 = vrot.slane %v512_v27, 2  ;;  %v569_v59 = vadd.f32 %v1495_v57, %v1492_v56 }
  0x31   : > { %vm1734_vm6 = vmand %vm1710_vm5, %vm437_vm10  ;;  %v580_v60 = vrot.slane %v514_v28, 3  ;;  %v491_v11 = vmul.f32 %v407_v20, %v1683_v10  ;;  %v501_v3 = vmul.f32 %v1676_v7, %v393_v9  ;;  %v532_v46 = vadd.f32 %v1439_v37, %v1746_v42 }
  0x32   : > { %vm2412_vm2 = vmmov %vm2409_vm4  ;;  %v581_v6 = vrot.slane %v516_v29, 3  ;;  %v946_v12 = vmul.f32 %v874_v14, %v1743_v39  ;;  %vm2418_vm4 = vcmask 1045504   ;;  %v1780_v9 = vadd.f32 %v544_v58, %v1489_v55 }
  0x33   : > { %v1739_v36 = vsel %vm2412_vm2, %v725_v26, %v736_v13  ;;  %vm1752_vm14 = vmand %vm1722_vm1, %vm439_vm9  ;;  %v545_v7 = vsel %vm2418_vm4, %v543_v40, %v544_v58  ;;  %vm2419_vm8 = vcmask 1044480   ;;  %v871_v23 = vunpack.c.l.bf16 %v1610_v44 }
  0x34   : > { %vm457_vm10 = vmand %vm1734_vm6, %vm445_vm11  ;;  %v944_v8 = vmul.f32 %v872_v0, %v1739_v36  ;;  %v1790_v15 = vadd.f32 %v545_v7, %v532_v46  ;;  %v582_v0 = vsel %vm2419_vm8, %v580_v60, %v581_v6  ;;  %v1800_v16 = vadd.f32 %v581_v6, %v1622_v48  ;;  %v513_v6 = vld [vmem:[%s1412_s26 + $0x30] sm:$0xf8]  ;;  %v515_v7 = vld [vmem:[%s1412_s26 + $0x40] sm:$0xf] }
  0x35   : > { %vm1770_vm9 = vmand %vm1752_vm14, %vm447_vm15  ;;  %v1782_v37 = vsel %vm457_vm10, %v461_v25, 0.0  ;;  %v1797_v14 = vadd.f32 %v582_v0, %v569_v59  ;;  %v1803_v5 = vfloor.f32 %v1780_v9  ;;  %v873_v26 = vunpack.c.l.bf16 %v1661_v63 }
  0x36   : > { %v467_v13 = vsel %vm1770_vm9, %v463_v31, 0.0  ;;  %vm469_vm2 = vmand %vm1734_vm6, %vm449_vm3  ;;  %v1815_v25 = vfloor.f32 %v1790_v15  ;;  %v939_v24 = vmul.f32 %v867_v54, %v1782_v37  ;;  %v1014_v27 = vpack.c.bf16 %v946_v12, %v944_v8 }
  0x37   : > { %vm471_vm4 = vmand %vm1752_vm14, %vm451_vm12  ;;  %v477_v55 = vsel %vm469_vm2, %v473_v33, 0.0  ;;  %v1830_v44 = vfloor.f32 %v1797_v14  ;;  %v1840_v28 = vfloor.f32 %v1800_v16  ;;  %v1853_v30 = vsub.f32 %v1780_v9, %v1803_v5 }
  0x38   : > { %v479_v17 = vsel %vm471_vm4, %v475_v35, 0.0  ;;  %vm1809_vm6 = vmand %vm1710_vm5, %vm441_vm13  ;;  %v720_v20 = vrot.slane %v477_v55, 7  ;;  %v1861_v35 = vsub.f32 %v1790_v15, %v1815_v25  ;;  %v1880_v51 = vmul.f32 %v1687_v43, %v1683_v10  ;;  %v509_v10 = vld [vmem:[%s1412_s26 + $0x20] sm:$0xfc] }
  0x39   : > { %vm1821_vm14 = vmand %vm1722_vm1, %vm443_vm7  ;;  %v722_v47 = vrot.slane %v479_v17, 7  ;;  %vm616_vm7 = vcmp.gt.f32.partialorder %v1790_v15, -1.0  ;;  %v1866_v29 = vsub.f32 %v1797_v14, %v1830_v44  ;;  %v1875_v40 = vsub.f32 %v1800_v16, %v1840_v28 }
  0x3a   : > { %vm485_vm5 = vmand %vm1809_vm6, %vm445_vm11  ;;  %v1837_v49 = vsel %vm719_vm0, %v467_v13, %v720_v20  ;;  %vm2428_vm9 = vcmask 1042432   ;;  %vm622_vm4 = vcmp.gt.f32.partialorder %v1800_v16, -1.0  ;;  %v610_v57 = vsub.f32 1.0, %v1853_v30 }
  0x3b   : > { %vm487_vm13 = vmand %vm1821_vm14, %vm447_vm15  ;;  %v493_v1 = vsel %vm485_vm5, %v489_v52, 0.0  ;;  %v941_v54 = vmul.f32 %v869_v62, %v1837_v49  ;;  %v723_v63 = vsel %vm719_vm0, %v720_v20, %v722_v47  ;;  %vm620_vm15 = vcmp.gt.f32.partialorder %v1797_v14, -1.0 }
  0x3c   : > { %v495_v31 = vsel %vm487_vm13, %v491_v11, 0.0  ;;  %vm497_vm11 = vmand %vm1809_vm6, %vm449_vm3  ;;  %v735_v33 = vrot.slane %v493_v1, 6  ;;  %vm2424_vm0 = vcmask 1041408   ;;  %vm618_vm3 = vcmp.gt.f32.partialorder %v1780_v9, -1.0  ;;  %v1896_v11 = vld [vmem:[%s1476_s30 + $0x20] sm:$0xff] }
  0x3d   : > { %v505_v2 = vsel %vm497_vm11, %v501_v3, 0.0  ;;  %v737_v62 = vrot.slane %v495_v31, 6  ;;  %v1011_v21 = vpack.c.bf16 %v941_v54, %v939_v24  ;;  %vm2425_vm1 = vmmov %vm2424_vm0  ;;  %v1893_v60 = vsel %vm2428_vm9, %v1693_v4, %v1700_v22  ;;  %v511_v4 = vld [vmem:[%s1412_s26 + $0x30] sm:$0x7] }
  0x3e   : > { %v1868_v41 = vrot.slane %v505_v2, 5  ;;  %v1871_v32 = vsel %vm2424_vm0, %v723_v63, %v735_v33  ;;  %vm1886_vm10 = vmand %vm616_vm7, %vm620_vm15  ;;  %vm628_vm6 = vcmp.lt.f32.partialorder %v1790_v15, 16.0  ;;  %vm630_vm5 = vcmp.lt.f32.partialorder %v1780_v9, 16.0 }
  0x3f   : > { %1064 = vmatpush1.bf16.msra.mxu1 %v1011_v21  ;;  %v738_v52 = vsel %vm2425_vm1, %v735_v33, %v737_v62  ;;  %v943_v58 = vmul.f32 %v871_v23, %v1871_v32  ;;  %vm1903_vm2 = vmand %vm1821_vm14, %vm451_vm12  ;;  %v608_v22 = vsub.f32 1.0, %v1861_v35  ;;  %v612_v46 = vsub.f32 1.0, %v1866_v29  ;;  %v1963_v23 = vld [vmem:[%s1476_s30 + $0x28] sm:$0xff] }
  0x40   : > { %1065 = vmatprep.subr.bf16.mxu1 %v1014_v27  ;;  %vm2431_vm8 = vmmov %vm2428_vm9  ;;  %vm636_vm14 = vcmp.lt.f32.partialorder %v1797_v14, 16.0  ;;  %vm2376_vm7 = vcmask 1043456   ;;  %v614_v8 = vsub.f32 1.0, %v1875_v40  ;;  %vm638_vm11 = vcmp.lt.f32.partialorder %v1800_v16, 16.0 }
  0x41   : > { %v1909_v3 = vsel %vm2431_vm8, %v738_v52, %v1868_v41  ;;  %vm626_vm12 = vmand %vm618_vm3, %vm622_vm4  ;;  %v876_v12 = vunpack.c.h.bf16 %v1896_v11  ;;  %vm644_vm0 = vcmp.ge.f32.partialorder %v1815_v25, 0.0  ;;  %vm646_vm3 = vcmp.ge.f32.partialorder %v1803_v5, 0.0 }
  0x42   : > { %v945_v53 = vmul.f32 %v873_v26, %v1909_v3  ;;  %vm632_vm13 = vmand %vm1886_vm10, %vm628_vm6  ;;  %vm652_vm1 = vcmp.ge.f32.partialorder %v1830_v44, 0.0  ;;  %vm2375_vm10 = vcmp.ge.f32.partialorder %v1840_v28, 0.0  ;;  %v531_v0 = vadd.f32 %v1435_v34, %v1746_v42 }
  0x43   : > { %vm634_vm15 = vmand %vm626_vm12, %vm630_vm5  ;;  %v540_v55 = vrot.slane %v509_v10, 2  ;;  %v541_v14 = vrot.slane %v511_v4, 2  ;;  %v2434_v9 = vmov 0  ;;  %v668_v16 = vmul.f32 %v612_v46, %v608_v22 }
  0x44   : > { %v1013_v13 = vpack.c.bf16 %v945_v53, %v943_v58  ;;  %vm1934_vm9 = vmand %vm632_vm13, %vm636_vm14  ;;  %v568_v17 = vadd.f32 %v1442_v38, %v1492_v56  ;;  %v577_v18 = vrot.slane %v513_v6, 3  ;;  %v578_v20 = vrot.slane %v515_v7, 3 }
  0x45   : > { %vm1941_vm8 = vmand %vm634_vm15, %vm638_vm11  ;;  %vm656_vm4 = vcmp.le.f32.partialorder %v1830_v44, 14.0  ;;  %v670_v42 = vmul.f32 %v614_v8, %v610_v57  ;;  %vm2438_vm5 = vcmask 1045504   ;;  %v552_v56 = vadd.f32 %v541_v14, %v1471_v50 }
  0x46   : > { %1066 = vmatpush1.bf16.msra.mxu1 %v1013_v13  ;;  %v2435_v9 = vsel %vm1941_vm8, 4294967295, %v2434_v9  ;;  %vm1954_vm6 = vmand %vm1934_vm9, %vm644_vm0  ;;  %v542_v38 = vsel %vm2438_vm5, %v540_v55, %v541_v14  ;;  %v680_v47 = vmul.f32 %v608_v22, %v1866_v29  ;;  %vm2441_vm14 = vcmask 1044480   ;;  %v2137_v13 = vld [vmem:[%s1476_s30 + $0x40] sm:$0xff] }
  0x47   : > { %vm1971_vm12 = vmand %vm1941_vm8, %vm646_vm3  ;;  %v550_v24 = vadd.f32 %v542_v38, %v531_v0  ;;  %v579_v26 = vsel %vm2441_vm14, %v577_v18, %v578_v20  ;;  %v589_v27 = vadd.f32 %v578_v20, %v1509_v61  ;;  %v507_v1 = vsel %vm1903_vm2, %v1880_v51, 0.0 }
  0x48   : > { %vm664_vm13 = vmand %vm1954_vm6, %vm652_vm1  ;;  %v587_v50 = vadd.f32 %v579_v26, %v568_v17  ;;  %v1985_v54 = vfloor.f32 %v552_v56  ;;  %vm648_vm11 = vcmp.le.f32.partialorder %v1815_v25, 14.0  ;;  %v878_v63 = vunpack.c.h.bf16 %v1963_v23 }
  0x49   : > { %vm666_vm15 = vmand %vm1971_vm12, %vm2375_vm10  ;;  %v672_v61 = vsel %vm664_vm13, %v668_v16, 0.0  ;;  %v1993_v31 = vfloor.f32 %v550_v24  ;;  %v1995_v33 = vfloor.f32 %v589_v27  ;;  %vm615_vm0 = vcmp.gt.f32.partialorder %v550_v24, -1.0 }
  0x4a   : > { %v674_v2 = vsel %vm666_vm15, %v670_v42, 0.0  ;;  %vm676_vm2 = vmand %vm1954_vm6, %vm656_vm4  ;;  %v766_v62 = vrot.slane %v672_v61, 4  ;;  %v2001_v21 = vfloor.f32 %v587_v50  ;;  %v2007_v59 = vsub.f32 %v552_v56, %v1985_v54  ;;  %v2067_v42 = vld [vmem:[%s1476_s30 + $0x30] sm:$0xff] }
  0x4b   : > { %v684_v51 = vsel %vm676_vm2, %v680_v47, 0.0  ;;  %v769_v52 = vrot.slane %v674_v2, 4  ;;  %v2004_v58 = vsub.f32 %v550_v24, %v1993_v31  ;;  %vm688_vm3 = vmand %vm1934_vm9, %vm648_vm11  ;;  %v2023_v53 = vsub.f32 %v589_v27, %v1995_v33 }
  0x4c   : > { %v2013_v10 = vrot.slane %v684_v51, 3  ;;  %v2017_v43 = vsel %vm2376_vm7, %v1893_v60, %v766_v62  ;;  %v2020_v4 = vsub.f32 %v587_v50, %v2001_v21  ;;  %vm617_vm6 = vcmp.gt.f32.partialorder %v552_v56, -1.0  ;;  %vm2029_vm9 = vmand %vm688_vm3, %vm652_vm1 }
  0x4d   : > { %v770_v22 = vsel %vm2376_vm7, %v766_v62, %v769_v52  ;;  %v948_v6 = vmul.f32 %v876_v12, %v2017_v43  ;;  %v752_v7 = vrot.slane %v507_v1, 5  ;;  %vm2444_vm5 = vmmov %vm2441_vm14  ;;  %vm619_vm14 = vcmp.gt.f32.partialorder %v587_v50, -1.0 }
  0x4e   : > { %v2035_v60 = vsel %vm2444_vm5, %v770_v22, %v2013_v10  ;;  %vm621_vm13 = vcmp.gt.f32.partialorder %v589_v27, -1.0  ;;  %vm2039_vm11 = vmand %vm688_vm3, %vm656_vm4  ;;  %v609_v15 = vsub.f32 1.0, %v2007_v59  ;;  %vm627_vm15 = vcmp.lt.f32.partialorder %v550_v24, 16.0 }
  0x4f   : > { %v950_v12 = vmul.f32 %v878_v63, %v2035_v60  ;;  %vm623_vm1 = vmand %vm615_vm0, %vm619_vm14  ;;  %vm629_vm2 = vcmp.lt.f32.partialorder %v552_v56, 16.0  ;;  %v607_v0 = vsub.f32 1.0, %v2004_v58  ;;  %v611_v55 = vsub.f32 1.0, %v2020_v4  ;;  %v2076_v56 = vld [vmem:[%s1476_s30 + $0x38] sm:$0xff] }
  0x50   : > { %v613_v14 = vsub.f32 1.0, %v2023_v53  ;;  %vm625_vm5 = vmand %vm617_vm6, %vm621_vm13  ;;  %vm635_vm4 = vcmp.lt.f32.partialorder %v587_v50, 16.0  ;;  %vm637_vm10 = vcmp.lt.f32.partialorder %v589_v27, 16.0  ;;  %vm643_vm8 = vcmp.ge.f32.partialorder %v1993_v31, 0.0 }
  0x51   : > { %v1016_v44 = vpack.c.bf16 %v950_v12, %v948_v6  ;;  %vm631_vm3 = vmand %vm623_vm1, %vm627_vm15  ;;  %vm2447_vm0 = vcmask 1042432   ;;  %v875_v17 = vunpack.c.l.bf16 %v1896_v11  ;;  %v877_v18 = vunpack.c.l.bf16 %v1963_v23  ;;  %v840_v12 = vld [vmem:[%s1476_s30 + $0x48] sm:$0xff]  ;;  %v842_v11 = vld [vmem:[%s1476_s30 + $0x58] sm:$0xff] }
  0x52   : > { %vm633_vm7 = vmand %vm625_vm5, %vm629_vm2  ;;  %v753_v16 = vsel %vm2447_vm0, %v1868_v41, %v752_v7  ;;  %vm645_vm6 = vcmp.ge.f32.partialorder %v1985_v54, 0.0  ;;  %vm651_vm13 = vcmp.ge.f32.partialorder %v2001_v21, 0.0  ;;  %v696_v34 = vmul.f32 %v612_v46, %v1861_v35 }
  0x53   : > { %1067 = vmatprep.subr.bf16.mxu1 %v1016_v44  ;;  %vm2055_vm14 = vmand %vm631_vm3, %vm635_vm4  ;;  %v708_v41 = vmul.f32 %v1866_v29, %v1861_v35  ;;  %vm653_vm15 = vcmp.ge.f32.partialorder %v1995_v33, 0.0  ;;  %vm655_vm2 = vcmp.le.f32.partialorder %v2001_v21, 14.0  ;;  %v667_v23 = vmul.f32 %v611_v55, %v607_v0 }
  0x54   : > { %vm2069_vm1 = vmand %vm633_vm7, %vm637_vm10  ;;  %v669_v38 = vmul.f32 %v613_v14, %v609_v15  ;;  %v679_v29 = vmul.f32 %v607_v0, %v2020_v4  ;;  %vm650_vm7 = vcmp.le.f32.partialorder %v1803_v5, 14.0  ;;  %vm2378_vm10 = vcmp.le.f32.partialorder %v1840_v28, 14.0 }
  0x55   : > { %vm2082_vm5 = vmand %vm2055_vm14, %vm643_vm8  ;;  %v700_v46 = vsel %vm2029_vm9, %v696_v34, 0.0  ;;  %v682_v24 = vmul.f32 %v610_v57, %v1875_v40  ;;  %v698_v26 = vmul.f32 %v614_v8, %v1853_v30  ;;  %v712_v27 = vsel %vm2039_vm11, %v708_v41, 0.0 }
  0x56   : > { %vm2095_vm4 = vmand %vm2069_vm1, %vm645_vm6  ;;  %v880_v1 = vunpack.c.h.bf16 %v2067_v42  ;;  %v882_v50 = vunpack.c.h.bf16 %v2076_v56  ;;  %vm647_vm9 = vcmp.le.f32.partialorder %v1993_v31, 14.0  ;;  %vm649_vm3 = vcmp.le.f32.partialorder %v1985_v54, 14.0 }
  0x57   : > { %vm663_vm8 = vmand %vm2082_vm5, %vm651_vm13  ;;  %vm657_vm0 = vcmp.le.f32.partialorder %v1995_v33, 14.0  ;;  %v794_v8 = vrot.slane %v700_v46, 2  ;;  %v681_v61 = vmul.f32 %v609_v15, %v2023_v53  ;;  %v695_v63 = vmul.f32 %v611_v55, %v2004_v58 }
  0x58   : > { %vm665_vm11 = vmand %vm2095_vm4, %vm653_vm15  ;;  %v671_v57 = vsel %vm663_vm8, %v667_v23, 0.0  ;;  %v2126_v51 = vrot.slane %v712_v27, 1  ;;  %v697_v52 = vmul.f32 %v613_v14, %v2007_v59  ;;  %v707_v25 = vmul.f32 %v2020_v4, %v2004_v58 }
  0x59   : > { %v673_v2 = vsel %vm665_vm11, %v669_v38, 0.0  ;;  %vm675_vm6 = vmand %vm2082_vm5, %vm655_vm2  ;;  %v765_v62 = vrot.slane %v671_v57, 4  ;;  %v879_v7 = vunpack.c.l.bf16 %v2067_v42  ;;  %vm2456_vm5 = vcmask 1043456   ;;  %v841_v38 = vld [vmem:[%s1476_s30 + $0x50] sm:$0xff] }
  0x5a   : > { %v683_v22 = vsel %vm675_vm6, %v679_v29, 0.0  ;;  %v767_v6 = vrot.slane %v673_v2, 4  ;;  %vm678_vm8 = vmand %vm1971_vm12, %vm2378_vm10  ;;  %vm2457_vm11 = vnez %v2435_v9  ;;  %v881_v58 = vunpack.c.l.bf16 %v2076_v56 }
  0x5b   : > { %v779_v15 = vrot.slane %v683_v22, 3  ;;  %v2141_v0 = vsel %vm2456_vm5, %v753_v16, %v765_v62  ;;  %v686_v55 = vsel %vm678_vm8, %v682_v24, 0.0  ;;  %vm2147_vm6 = vmand %vm2457_vm11, %vm650_vm7  ;;  %vm2461_vm10 = vcmp.ge.f32.partialorder %v1840_v28, 0.0 }
  0x5c   : > { %vm2460_vm12 = vmmov %vm2456_vm5  ;;  %v947_v14 = vmul.f32 %v875_v17, %v2141_v0  ;;  %v783_v44 = vrot.slane %v686_v55, 3  ;;  %v710_v5 = vmul.f32 %v1875_v40, %v1853_v30  ;;  %vm2462_vm7 = vcmask 1044480  }
  0x5d   : > { %v768_v4 = vsel %vm2460_vm12, %v765_v62, %v767_v6  ;;  %vm694_vm8 = vmand %vm2147_vm6, %vm2461_vm10  ;;  %v884_v17 = vunpack.c.h.bf16 %v2137_v13  ;;  %v886_v34 = vunpack.c.h.bf16 %v840_v12  ;;  %v709_v31 = vmul.f32 %v2023_v53, %v2007_v59 }
  0x5e   : > { %v2161_v9 = vsel %vm2462_vm7, %v768_v4, %v779_v15  ;;  %v702_v16 = vsel %vm694_vm8, %v698_v26, 0.0  ;;  %vm677_vm5 = vmand %vm2095_vm4, %vm657_vm0  ;;  %vm2466_vm4 = vcmask 1045504   ;;  %v885_v20 = vunpack.c.l.bf16 %v840_v12  ;;  %v844_v12 = vld [vmem:[%s1476_s30 + $0x68] sm:$0xff] }
  0x5f   : > { %v949_v41 = vmul.f32 %v877_v18, %v2161_v9  ;;  %vm2463_vm10 = vmmov %vm2462_vm7  ;;  %v797_v23 = vrot.slane %v702_v16, 2  ;;  %v685_v30 = vsel %vm677_vm5, %v681_v61, 0.0  ;;  %v883_v54 = vunpack.c.l.bf16 %v2137_v13  ;;  %v843_v13 = vld [vmem:[%s1476_s30 + $0x60] sm:$0xff] }
  0x60   : > { %v784_v42 = vsel %vm2463_vm10, %v2013_v10, %v783_v44  ;;  %vm2175_vm11 = vmand %vm2055_vm14, %vm647_vm9  ;;  %v781_v18 = vrot.slane %v685_v30, 3  ;;  %v888_v24 = vunpack.c.h.bf16 %v841_v38  ;;  %v958_v57 = vmul.f32 %v886_v34, %v1565_v19  ;;  %v846_v30 = vld [vmem:[%s1476_s30 + $0x78] sm:$0xff] }
  0x61   : > { %v2181_v56 = vsel %vm2466_vm4, %v784_v42, %v794_v8  ;;  %vm2187_vm12 = vmand %vm2069_vm1, %vm649_vm3  ;;  %v1015_v35 = vpack.c.bf16 %v949_v41, %v947_v14  ;;  %vm2470_vm1 = vcmask 1046528   ;;  %v887_v48 = vunpack.c.l.bf16 %v841_v38 }
  0x62   : > { %vm2469_vm14 = vmmov %vm2466_vm4  ;;  %v952_v46 = vmul.f32 %v880_v1, %v2181_v56  ;;  %v889_v33 = vunpack.c.l.bf16 %v842_v11  ;;  %v892_v34 = vunpack.c.h.bf16 %v843_v13  ;;  %v894_v41 = vunpack.c.h.bf16 %v844_v12 }
  0x63   : > { %v798_v29 = vsel %vm2469_vm14, %v794_v8, %v797_v23  ;;  %vm691_vm9 = vmand %vm2175_vm11, %vm651_vm13  ;;  %1068 = vmatpush1.bf16.msra.mxu1 %v1015_v35  ;;  %v959_v40 = vmul.f32 %v887_v48, %v1837_v49  ;;  %v891_v10 = vunpack.c.l.bf16 %v843_v13 }
  0x64   : > { %v2203_v47 = vsel %vm2470_vm1, %v798_v29, %v2126_v51  ;;  %vm693_vm3 = vmand %vm2187_vm12, %vm653_vm15  ;;  %v699_v59 = vsel %vm691_vm9, %v695_v63, 0.0  ;;  %vm2472_vm15 = vcmp.le.f32.partialorder %v1840_v28, 14.0  ;;  %v890_v63 = vunpack.c.h.bf16 %v842_v11  ;;  %v848_v11 = vld [vmem:[%s1476_s30 + $0x88] sm:$0xff] }
  0x65   : > { %vm2471_vm8 = vmmov %vm2462_vm7  ;;  %v954_v26 = vmul.f32 %v882_v50, %v2203_v47  ;;  %v701_v27 = vsel %vm693_vm3, %v697_v52, 0.0  ;;  %v793_v1 = vrot.slane %v699_v59, 2  ;;  %v957_v50 = vmul.f32 %v885_v20, %v1782_v37 }
  0x66   : > { %v782_v53 = vsel %vm2471_vm8, %v779_v15, %v781_v18  ;;  %vm703_vm13 = vmand %vm2175_vm11, %vm655_vm2  ;;  %v795_v61 = vrot.slane %v701_v27, 2  ;;  %v962_v44 = vmul.f32 %v890_v63, %v1739_v36  ;;  %v961_v38 = vmul.f32 %v889_v33, %v1871_v32 }
  0x67   : > { %v711_v8 = vsel %vm703_vm13, %v707_v25, 0.0  ;;  %vm706_vm7 = vmand %vm2147_vm6, %vm2472_vm15  ;;  %v1018_v2 = vpack.c.bf16 %v954_v26, %v952_v46  ;;  %v964_v20 = vmul.f32 %v892_v34, %v1743_v39  ;;  %v966_v35 = vmul.f32 %v894_v41, %v2017_v43  ;;  %v854_v34 = vld [vmem:[%s1476_s30 + $0xb8] sm:$0xff] }
  0x68   : > { %v807_v21 = vrot.slane %v711_v8, 1  ;;  %vm2473_vm5 = vmmov %vm2466_vm4  ;;  %v714_v52 = vsel %vm706_vm7, %v710_v5, 0.0  ;;  %v898_v46 = vunpack.c.h.bf16 %v846_v30  ;;  %v1021_v59 = vpack.c.bf16 %v961_v38, %v959_v40  ;;  %v850_v8 = vld [vmem:[%s1476_s30 + $0x98] sm:$0xff] }
  0x69   : > { %v2222_v62 = vsel %vm2473_vm5, %v782_v53, %v793_v1  ;;  %vm705_vm2 = vmand %vm2187_vm12, %vm657_vm0  ;;  %v811_v6 = vrot.slane %v714_v52, 1  ;;  %1069 = vmatprep.subr.bf16.mxu1 %v1018_v2  ;;  %v963_v53 = vmul.f32 %v891_v10, %v1909_v3  ;;  %v897_v27 = vunpack.c.l.bf16 %v846_v30 }
  0x6a   : > { %vm2474_vm10 = vmmov %vm2466_vm4  ;;  %v951_v28 = vmul.f32 %v879_v7, %v2222_v62  ;;  %v713_v25 = vsel %vm705_vm2, %v709_v31, 0.0  ;;  %v960_v7 = vmul.f32 %v888_v24, %v1626_v45  ;;  %v893_v31 = vunpack.c.l.bf16 %v844_v12 }
  0x6b   : > { %v796_v22 = vsel %vm2474_vm10, %v793_v1, %v795_v61  ;;  %vm2475_vm6 = vmmov %vm2470_vm1  ;;  %v809_v55 = vrot.slane %v713_v25, 1  ;;  %v1024_v61 = vpack.c.bf16 %v966_v35, %v964_v20  ;;  %v970_v63 = vmul.f32 %v898_v46, %v2181_v56  ;;  %v852_v25 = vld [vmem:[%s1476_s30 + $0xa8] sm:$0xff] }
  0x6c   : > { %v2233_v15 = vsel %vm2475_vm6, %v796_v22, %v807_v21  ;;  %vm2476_vm0 = vmmov %vm2470_vm1  ;;  %v1022_v18 = vpack.c.bf16 %v962_v44, %v960_v7  ;;  %v965_v24 = vmul.f32 %v893_v31, %v2141_v0  ;;  %v902_v2 = vunpack.c.h.bf16 %v848_v11  ;;  %v863_v31 = vld [vmem:[%s1476_s30 + $0x100] sm:$0xff]  ;;  %v864_v46 = vld [vmem:[%s1476_s30 + $0x108] sm:$0xff] }
  0x6d   : > { %v953_v4 = vmul.f32 %v881_v58, %v2233_v15  ;;  %v2238_v14 = vsel %vm2476_vm0, %v2126_v51, %v811_v6  ;;  %vm2477_vm11 = vmmov %vm2476_vm0  ;;  %v845_v58 = vld [vmem:[%s1476_s30 + $0x70] sm:$0xff]  ;;  %v901_v52 = vunpack.c.l.bf16 %v848_v11  ;;  %v851_v6 = vld [vmem:[%s1476_s30 + $0xa0] sm:$0xff]  ;;  %v905_v44 = vunpack.c.l.bf16 %v850_v8 }
  0x6e   : > { %v956_v5 = vmul.f32 %v884_v17, %v2238_v14  ;;  %v2244_v16 = vsel %vm2477_vm11, %v807_v21, %v809_v55  ;;  %v896_v29 = vunpack.c.h.bf16 %v845_v58  ;;  %v895_v26 = vunpack.c.l.bf16 %v845_v58 }
  0x6f   : > { %v1017_v42 = vpack.c.bf16 %v953_v4, %v951_v28  ;;  %v955_v23 = vmul.f32 %v883_v54, %v2244_v16  ;;  %v847_v54 = vld [vmem:[%s1476_s30 + $0x80] sm:$0xff]  ;;  %v906_v28 = vunpack.c.h.bf16 %v850_v8  ;;  %v1023_v13 = vpack.c.bf16 %v965_v24, %v963_v53 }
  0x70   : > { %v1020_v51 = vpack.c.bf16 %v958_v57, %v956_v5  ;;  %v900_v1 = vunpack.c.h.bf16 %v847_v54  ;;  %v849_v57 = vld [vmem:[%s1476_s30 + $0x90] sm:$0xff]  ;;  %v899_v21 = vunpack.c.l.bf16 %v847_v54  ;;  %v967_v12 = vmul.f32 %v895_v26, %v2161_v9  ;;  %v2286_v24 = vld [vmem:[%s1476_s30 + $0xc0] sm:$0xff] }
  0x71   : > { %1070 = vmatpush1.bf16.msra.mxu1 %v1017_v42  ;;  %v1019_v17 = vpack.c.bf16 %v957_v50, %v955_v23  ;;  %v968_v50 = vmul.f32 %v896_v29, %v2035_v60  ;;  %v904_v22 = vunpack.c.h.bf16 %v849_v57  ;;  %v969_v55 = vmul.f32 %v897_v27, %v2222_v62  ;;  %v853_v5 = vld [vmem:[%s1476_s30 + $0xb0] sm:$0xff] }
  0x72   : > { %1071 = vmatprep.subr.bf16.mxu1 %v1020_v51  ;;  %v972_v48 = vmul.f32 %v900_v1, %v2203_v47  ;;  %v974_v4 = vmul.f32 %v902_v2, %v2238_v14  ;;  %v903_v7 = vunpack.c.l.bf16 %v849_v57  ;;  %v908_v41 = vunpack.c.h.bf16 %v851_v6 }
  0x73   : > { %v1026_v33 = vpack.c.bf16 %v970_v63, %v968_v50  ;;  %v910_v42 = vunpack.c.h.bf16 %v852_v25  ;;  %v907_v23 = vunpack.c.l.bf16 %v851_v6  ;;  %v909_v58 = vunpack.c.l.bf16 %v852_v25  ;;  %v2295_v63 = vld [vmem:[%s1476_s30 + $0xc8] sm:$0xff]  ;;  %v865_v6 = vld [vmem:[%s1476_s30 + $0x110] sm:$0xff] }
  0x74   : > { %v971_v30 = vmul.f32 %v899_v21, %v2233_v15  ;;  %v973_v51 = vmul.f32 %v901_v52, %v2244_v16  ;;  %v976_v40 = vmul.f32 %v904_v22, %v1565_v19  ;;  %v978_v38 = vmul.f32 %v906_v28, %v1626_v45 }
  0x75   : > { %1072 = vmatpush1.bf16.msra.mxu1 %v1019_v17  ;;  %v1025_v10 = vpack.c.bf16 %v969_v55, %v967_v12  ;;  %v912_v17 = vunpack.c.h.bf16 %v853_v5  ;;  %v1028_v20 = vpack.c.bf16 %v974_v4, %v972_v48  ;;  %v975_v35 = vmul.f32 %v903_v7, %v1782_v37  ;;  %v866_v48 = vld [vmem:[%s1476_s30 + $0x118] sm:$0xff] }
  0x76   : > { %1073 = vmatprep.subr.bf16.mxu1 %v1022_v18  ;;  %v914_v18 = vunpack.c.h.bf16 %v854_v34  ;;  %v977_v29 = vmul.f32 %v905_v44, %v1837_v49  ;;  %v980_v54 = vmul.f32 %v908_v41, %v1739_v36  ;;  %v982_v11 = vmul.f32 %v910_v42, %v1743_v39  ;;  %v2314_v42 = vld [vmem:[%s1476_s30 + $0xf0] sm:$0xff] }
  0x77   : > { %v2283_v53 = vmul.f32 %v909_v58, %v1909_v3  ;;  %v1027_v26 = vpack.c.bf16 %v973_v51, %v971_v30  ;;  %v1030_v27 = vpack.c.bf16 %v978_v38, %v976_v40  ;;  %v911_v1 = vunpack.c.l.bf16 %v853_v5  ;;  %v857_v51 = vld [vmem:[%s1476_s30 + $0xd0] sm:$0xff] }
  0x78   : > { %v932_v57 = vunpack.c.h.bf16 %v863_v31  ;;  %v2289_v8 = vmul.f32 %v912_v17, %v2017_v43  ;;  %v913_v50 = vunpack.c.l.bf16 %v854_v34  ;;  %v934_v2 = vunpack.c.h.bf16 %v864_v46  ;;  %v858_v17 = vld [vmem:[%s1476_s30 + $0xd8] sm:$0xff] }
  0x79   : > { %1074 = vmatpush1.bf16.msra.mxu1 %v1021_v59  ;;  %v2280_v59 = vmul.f32 %v907_v23, %v1871_v32  ;;  %v916_v21 = vunpack.c.h.bf16 %v2286_v24  ;;  %v931_v22 = vunpack.c.l.bf16 %v863_v31  ;;  %v933_v28 = vunpack.c.l.bf16 %v864_v46  ;;  %v2317_v23 = vld [vmem:[%s1476_s30 + $0xf8] sm:$0xff] }
  0x7a   : > { %1075 = vmatprep.subr.bf16.mxu1 %v1024_v61  ;;  %v2292_v61 = vmul.f32 %v914_v18, %v2035_v60  ;;  %v1004_v52 = vmul.f32 %v932_v57, %v2035_v60  ;;  %v1029_v25 = vpack.c.bf16 %v977_v29, %v975_v35  ;;  %v1006_v55 = vmul.f32 %v934_v2, %v2181_v56  ;;  %v859_v57 = vld [vmem:[%s1476_s30 + $0xe0] sm:$0xff] }
  0x7b   : > { %v1031_v12 = vpack.c.bf16 %v2283_v53, %v2280_v59  ;;  %v918_v4 = vunpack.c.h.bf16 %v2295_v63  ;;  %v1003_v60 = vmul.f32 %v931_v22, %v2161_v9  ;;  %v1005_v7 = vmul.f32 %v933_v28, %v2222_v62  ;;  %v1047_v59 = vld [vmem:[%s2372_s3] sm:$0xff] }
  0x7c   : > { %v1034_v44 = vpack.c.bf16 %v2292_v61, %v2289_v8  ;;  %v985_v5 = vmul.f32 %v913_v50, %v2161_v9  ;;  %v1044_v34 = vpack.c.bf16 %v1006_v55, %v1004_v52  ;;  %v936_v41 = vunpack.c.h.bf16 %v865_v6  ;;  %v860_v8 = vld [vmem:[%s1476_s30 + $0xe8] sm:$0xff] }
  0x7d   : > { %1076 = vmatpush1.bf16.msra.mxu1 %v1023_v13  ;;  %v1032_v13 = vpack.c.bf16 %v982_v11, %v980_v54  ;;  %v988_v58 = vmul.f32 %v916_v21, %v2181_v56  ;;  %v915_v30 = vunpack.c.l.bf16 %v2286_v24  ;;  %v1043_v40 = vpack.c.bf16 %v1005_v7, %v1003_v60  ;;  %v1322_v21 = vld [vmem:[%s2372_s3 + $0x8] ss:$0 sps:$4 sm:$0xff]  }
  0x7e   : > { %1077 = vmatprep.subr.bf16.mxu1 %v1026_v33  ;;  %v2305_v33 = vmul.f32 %v911_v1, %v2141_v0  ;;  %v938_v38 = vunpack.c.h.bf16 %v866_v48  ;;  %1104 = vmatprep.subr.bf16.mxu0 %v1044_v34  ;;  %v1008_v9 = vmul.f32 %v936_v41, %v2203_v47  ;;  %v935_v18 = vunpack.c.l.bf16 %v865_v6 }
  0x7f   : > { %v937_v31 = vunpack.c.l.bf16 %v866_v48  ;;  %1105 = vmatpush1.bf16.msra.mxu0 %v1043_v40  ;;  %v928_v56 = vunpack.c.h.bf16 %v2314_v42  ;;  %v930_v29 = vunpack.c.h.bf16 %v2317_v23  ;;  %v920_v46 = vunpack.c.h.bf16 %v857_v51 }
  0x80   : > { %v1010_v35 = vmul.f32 %v938_v38, %v2238_v14  ;;  %v1007_v54 = vmul.f32 %v935_v18, %v2233_v15  ;;  %v1033_v1 = vpack.c.bf16 %v985_v5, %v2305_v33  ;;  %v919_v50 = vunpack.c.l.bf16 %v857_v51 }
  0x81   : > { %1078 = vmatpush1.bf16.msra.mxu1 %v1025_v10  ;;  %v917_v10 = vunpack.c.l.bf16 %v2295_v63  ;;  %v1009_v11 = vmul.f32 %v937_v31, %v2244_v16  ;;  %v1000_v24 = vmul.f32 %v928_v56, %v1743_v39  ;;  %v921_v63 = vunpack.c.l.bf16 %v858_v17 }
  0x82   : > { %1079 = vmatprep.subr.bf16.mxu1 %v1028_v20  ;;  %v990_v20 = vmul.f32 %v918_v4, %v2203_v47  ;;  %v922_v47 = vunpack.c.h.bf16 %v858_v17  ;;  %v1046_v53 = vpack.c.bf16 %v1010_v35, %v1008_v9  ;;  %v1286_v52 = vcombine.high %v1047_v59, %v1047_v59 }
  0x83   : > { %v1045_v61 = vpack.c.bf16 %v1009_v11, %v1007_v54  ;;  %v989_v22 = vmul.f32 %v917_v10, %v2233_v15  ;;  %vm1059_vm4 = vcmask 261120   ;;  %v992_v28 = vmul.f32 %v920_v46, %v2238_v14 }
  0x84   : > { %1106 = vmatprep.subr.bf16.mxu0 %v1046_v53  ;;  %v1036_v39 = vpack.c.bf16 %v990_v20, %v988_v58  ;;  %v994_v6 = vmul.f32 %v922_v47, %v1565_v19  ;;  %1095 = vmatprep.mubr.bf16.mxu1 %v1286_v52  ;;  %v991_v55 = vmul.f32 %v919_v50, %v2244_v16  ;;  %v925_v33 = vunpack.c.l.bf16 %v860_v8 }
  0x85   : > { %1080 = vmatpush1.bf16.msra.mxu1 %v1027_v26  ;;  %v1002_v26 = vmul.f32 %v930_v29, %v2017_v43  ;;  %v987_v43 = vmul.f32 %v915_v30, %v2222_v62  ;;  %1107 = vmatpush1.bf16.msra.mxu0 %v1045_v61  ;;  %v993_v48 = vmul.f32 %v921_v63, %v1782_v37  ;;  %v923_v62 = vunpack.c.l.bf16 %v859_v57 }
  0x86   : > { %1081 = vmatprep.subr.bf16.mxu1 %v1030_v27  ;;  %v1350_v27 = vmov 0   ;;  %v1038_v15 = vpack.c.bf16 %v994_v6, %v992_v28  ;;  %v997_v7 = vmul.f32 %v925_v33, %v1871_v32  ;;  %v927_v16 = vunpack.c.l.bf16 %v2314_v42 }
  0x87   : > { %1136 = vmatprep.mubr.bf16.mxu0 %v1350_v27  ;;  %v1042_v2 = vpack.c.bf16 %v1002_v26, %v1000_v24  ;;  %v1037_v60 = vpack.c.bf16 %v993_v48, %v991_v55  ;;  %v995_v19 = vmul.f32 %v923_v62, %v1837_v49  ;;  %v929_v37 = vunpack.c.l.bf16 %v2317_v23 }
  0x88   : > { %1288 = vmatmul.mubr.msk.bf16.vlgmr.msra.gmra.mrb[0].mxu0 %vm1059_vm4, %v1322_v21  ;;  %v999_v34 = vmul.f32 %v927_v16, %v1909_v3  ;;  %v1285_v49 = vcombine.low %v1047_v59, %v1047_v59 }
  0x89   : > { %1082 = vmatpush1.bf16.msra.mxu1 %v1029_v25  ;;  %v924_v25 = vunpack.c.h.bf16 %v859_v57  ;;  %v1039_v5 = vpack.c.bf16 %v997_v7, %v995_v19 }
  0x8a   : > { %1083 = vmatprep.subr.bf16.mxu1 %v1032_v13  ;;  %v926_v13 = vunpack.c.h.bf16 %v860_v8 }
  0x8b   : > { %v996_v4 = vmul.f32 %v924_v25, %v1626_v45  ;;  %v1001_v45 = vmul.f32 %v929_v37, %v2141_v0 }
  0x8c   : > { %v998_v14 = vmul.f32 %v926_v13, %v1739_v36 }
  0x8d   : > { %1084 = vmatpush1.bf16.msra.mxu1 %v1031_v12  ;;  %v1035_v12 = vpack.c.bf16 %v989_v22, %v987_v43  ;;  %v1041_v36 = vpack.c.bf16 %v1001_v45, %v999_v34 }
  0x8e   : > { %1085 = vmatprep.subr.bf16.mxu1 %v1034_v44  ;;  %v1040_v44 = vpack.c.bf16 %v998_v14, %v996_v4 }
  0x91   : > { %1086 = vmatpush1.bf16.msra.mxu1 %v1033_v1 }
  0x92   : > { %1087 = vmatprep.subr.bf16.mxu1 %v1036_v39 }
  0x95   : > { %1088 = vmatpush1.bf16.msra.mxu1 %v1035_v12 }
  0x96   : > { %1089 = vmatprep.subr.bf16.mxu1 %v1038_v15 }
  0x99   : > { %1090 = vmatpush1.bf16.msra.mxu1 %v1037_v60 }
  0x9a   : > { %1091 = vmatprep.subr.bf16.mxu1 %v1040_v44 }
  0x9d   : > { %1092 = vmatpush1.bf16.msra.mxu1 %v1039_v5 }
  0x9e   : > { %1093 = vmatprep.subr.bf16.mxu1 %v1042_v2 }
  0xa1   : > { %1094 = vmatpush1.bf16.msra.mxu1 %v1041_v36 }
  0xa4   : > { %1096 = vmatmul.mubr.bf16.vlgmr.msra.gmra.mrb[0].mxu1 %v1285_v49 }
 0x15b   : > { %v1138_v32 = vpop.f32.mrb[0].mxu0 }
 0x15c   : > { %v1140_v41 = vpop.f32.mrb[1].mxu0 }
 0x15d   : > { %v1142_v42 = vpop.f32.mrb[2].mxu0 }
 0x15e   : > { %v1143_v23 = vpop.f32.mrb[3].mxu0 }
 0x177   : > { %v1097_v58 = vpop.f32.mrb[0].mxu1 }
 0x178   : > { %v1139_v3 = vadd.f32 %v1138_v32, %v1097_v58  ;;  %v1099_v30 = vpop.f32.mrb[1].mxu1 }
 0x179   : > { %v1141_v0 = vadd.f32 %v1140_v41, %v1099_v30  ;;  %v1101_v51 = vpop.f32.mrb[2].mxu1 }
 0x17a   : > { %1145 = vst [vmem:[%s293_s12] sm:$0xff] %v1139_v3  ;;  %v1102_v40 = vpop.f32.mrb[3].mxu1 }
 0x17b   : > { %1146 = vst [vmem:[%s293_s12 + $0x8] sm:$0xff] %v1141_v0 }
 0x17c PF: > { %s14_s17 = sadd.s32 1, %s1347_s17   ;;  %s2478_s15 = smov %s1343_s16 }
 0x17d   : > { %p11_p5 = scmp.ge.s32.totalorder %s14_s17, 4   ;;  %s2479_s16 = smov %s2481_s18 }
 0x17f   :  { %13 = sbr.rel (!%p11_p5) target bundleno = 2 (0x2), region = 73 }

</bundles_post_ra>
